<compile_context>
chip_gen: v6e
topology: v6e:2x2x1
jax: 0.10.0
libtpu: 0.0.40
codegen_flags: <defaults>
</compile_context>

<pallas_src>
import functools

import jax
import jax.numpy as jnp
from jax.experimental import pallas as pl
from jax.experimental.pallas import tpu as pltpu


def _layernorm_f32(x, gamma, beta, eps=1e-5):
    # Fused-moment form: E[x^2] - E[x]^2 — the two lane reductions are
    # independent (better ILP than mean -> center -> mean of squares).
    mu = jnp.mean(x, axis=-1, keepdims=True)
    ex2 = jnp.mean(x * x, axis=-1, keepdims=True)
    var = jnp.maximum(ex2 - mu * mu, 0.0)
    return (x - mu) * jax.lax.rsqrt(var + eps) * gamma + beta


def _gelu_exact(x):
    # nn.GELU default = exact (erf) GELU; kept exact for semantic fidelity.
    return 0.5 * x * (1.0 + jax.lax.erf(x * (2.0 ** -0.5)))


# ---------------------------------------------------------------------------
# Kernel: one grid step processes `block_b` batch elements entirely in VMEM.
# ---------------------------------------------------------------------------
def attention_block_kernel(xk_ref, xq_ref,
                           gk_ref, bk_ref, gq_ref, bq_ref,
                           wq_ref, wkv_ref, wp_ref, bp_ref,
                           g2_ref, b2_ref,
                           w1_ref, bfc1_ref, w2_ref, bfc2_ref,
                           out_ref, *, num_heads, head_dim):
    bt, nk, ck = xk_ref.shape
    _, nq, cq = xq_ref.shape
    out_dim = num_heads * head_dim
    rows_q = bt * nq
    rows_k = bt * nk

    # ---- LayerNorms in f32 on the flattened (rows, C) activations ----------
    xk_n = _layernorm_f32(xk_ref[...].astype(jnp.float32).reshape(rows_k, ck),
                          gk_ref[...], bk_ref[...])
    xq_n = _layernorm_f32(xq_ref[...].astype(jnp.float32).reshape(rows_q, cq),
                          gq_ref[...], bq_ref[...])

    # ---- projections: bf16 in, f32 accumulate -------------------------------
    # Wq is pre-scaled by head_dim**-0.5 on the host; k and v come from ONE
    # GEMM against the un-split Wkv (single weight-stationary pass).
    q = jnp.dot(xq_n.astype(jnp.bfloat16), wq_ref[...],
                preferred_element_type=jnp.float32)              # (rows_q, H*D)
    kv = jnp.dot(xk_n.astype(jnp.bfloat16), wkv_ref[...],
                 preferred_element_type=jnp.float32)             # (rows_k, 2*H*D)
    q_bf = q.astype(jnp.bfloat16)
    kv_bf = kv.astype(jnp.bfloat16)

    # Block-diagonal additive mask so several batch elements can share one
    # grid step without a per-batch loop / concat (only built when bt > 1).
    if bt > 1:
        rb = jax.lax.broadcasted_iota(jnp.int32, (rows_q, rows_k), 0) // nq
        cb = jax.lax.broadcasted_iota(jnp.int32, (rows_q, rows_k), 1) // nk
        neg_mask = jnp.where(rb == cb, 0.0, -1e30).astype(jnp.float32)

    # ---- attention: per-head 2-D MXU dots on static lane slices ------------
    # (no (H, M, D) stack materialisation; head recombination is a single
    #  lane concat feeding one K=out_dim projection GEMM)
    o_parts = []
    for h in range(num_heads):                                   # static, small
        lo, hi = h * head_dim, (h + 1) * head_dim
        q_h = q_bf[:, lo:hi]                                     # (rows_q, D)
        k_h = kv_bf[:, lo:hi]                                    # (rows_k, D)
        v_h = kv_bf[:, out_dim + lo:out_dim + hi]                # (rows_k, D)
        s = jnp.einsum('qd,kd->qk', q_h, k_h,
                       preferred_element_type=jnp.float32)       # (rows_q, rows_k)
        if bt > 1:
            s = s + neg_mask
        s = s - jnp.max(s, axis=-1, keepdims=True)
        p = jnp.exp(s)
        p = p * pl.reciprocal(jnp.sum(p, axis=-1, keepdims=True), approx=True)
        o_parts.append(jnp.dot(p.astype(jnp.bfloat16), v_h,
                               preferred_element_type=jnp.float32))
    o = jnp.concatenate(o_parts, axis=-1) if num_heads > 1 else o_parts[0]

    # ---- output projection: ONE GEMM with K = out_dim ----------------------
    x = jnp.dot(o.astype(jnp.bfloat16), wp_ref[...],
                preferred_element_type=jnp.float32) + bp_ref[...]

    # ---- x = x + Mlp(norm2(x)); h1 row-chunked to bound f32 VMEM -----------
    xn = _layernorm_f32(x, g2_ref[...], b2_ref[...])
    chunk = rows_q
    if rows_q > 256:
        for c in (256, 128, 64):
            if rows_q % c == 0:
                chunk = c
                break
    h2_parts = []
    for r0 in range(0, rows_q, chunk):                           # static loop
        xn_c = xn[r0:r0 + chunk, :]
        h1 = jnp.dot(xn_c.astype(jnp.bfloat16), w1_ref[...],
                     preferred_element_type=jnp.float32) + bfc1_ref[...]
        h1 = _gelu_exact(h1)
        h2_parts.append(jnp.dot(h1.astype(jnp.bfloat16), w2_ref[...],
                                preferred_element_type=jnp.float32) + bfc2_ref[...])
    h2 = jnp.concatenate(h2_parts, axis=0) if len(h2_parts) > 1 else h2_parts[0]

    out_ref[...] = (x + h2).reshape(bt, nq, out_dim).astype(out_ref.dtype)


# ---------------------------------------------------------------------------
# Wrapper: host-side weight prep + BlockSpecs + pallas_call.
# ---------------------------------------------------------------------------
def _pick_block_b(B, Nq, target_rows=256, max_rows=1024):
    # Divisor of B that (a) keeps >= 2 grid steps so both v7x TensorCores get
    # work, (b) caps rows to bound VMEM, (c) prefers rows >= 256 to fill the
    # 256-wide MXU M tiles on v6e/v7x.
    cands = [d for d in range(1, B + 1)
             if B % d == 0 and (B // d >= 2 or B < 2) and d * Nq <= max_rows]
    if not cands:
        return 1
    for d in cands:
        if d * Nq >= target_rows:
            return d
    return cands[-1]


def attention_block(xk, xq, params, *, num_heads, block_b=None):
    B, Nk, Ck = xk.shape
    Bq, Nq, Cq = xq.shape
    assert B == Bq
    out_dim = params["wq"].shape[1]
    head_dim = out_dim // num_heads
    hidden = params["w1"].shape[1]
    scale = head_dim ** (-0.5)

    if block_b is None:
        block_b = _pick_block_b(B, Nq)
    assert B % block_b == 0
    grid = (B // block_b,)

    # Host-side (free) weight prep: fold softmax scale into Wq, bf16-cast all
    # MXU weight operands (f32 accumulation in the kernel keeps accuracy).
    wq = (params["wq"] * scale).astype(jnp.bfloat16)
    wkv = params["wkv"].astype(jnp.bfloat16)
    wp = params["wp"].astype(jnp.bfloat16)
    w1 = params["w1"].astype(jnp.bfloat16)
    w2 = params["w2"].astype(jnp.bfloat16)

    kernel = functools.partial(attention_block_kernel,
                               num_heads=num_heads, head_dim=head_dim)

    def rep(shape):
        # Replicated (grid-invariant) operand: single-buffer it — the second
        # pipeline buffer would be pure VMEM waste.
        nd = len(shape)
        idx = lambda b, _n=nd: (0,) * _n
        try:
            return pl.BlockSpec(shape, idx, pipeline_mode=pl.Buffered(1))
        except TypeError:  # older jax without pipeline_mode: fall back safely
            return pl.BlockSpec(shape, idx)

    in_specs = [
        pl.BlockSpec((block_b, Nk, Ck), lambda b: (b, 0, 0)),   # xk
        pl.BlockSpec((block_b, Nq, Cq), lambda b: (b, 0, 0)),   # xq
        rep((1, Ck)), rep((1, Ck)),                             # norm1_k g/b
        rep((1, Cq)), rep((1, Cq)),                             # norm1_q g/b
        rep((Cq, out_dim)),                                     # Wq (scaled)
        rep((Ck, 2 * out_dim)),                                 # Wkv (un-split)
        rep((out_dim, out_dim)),                                # Wp
        rep((1, out_dim)),                                      # bproj
        rep((1, out_dim)), rep((1, out_dim)),                   # norm2 g/b
        rep((out_dim, hidden)), rep((1, hidden)),               # fc1
        rep((hidden, out_dim)), rep((1, out_dim)),              # fc2
    ]

    # Advisory cost estimate so XLA schedules neighbours / prefetch sensibly.
    flops = 2 * (B * Nq * Cq * out_dim                # q proj
                 + B * Nk * Ck * 2 * out_dim          # kv proj
                 + 2 * B * Nq * Nk * out_dim          # qk^T + attn@v
                 + B * Nq * out_dim * out_dim         # out proj
                 + 2 * B * Nq * out_dim * hidden)     # mlp
    transcendentals = B * num_heads * Nq * Nk + B * Nq * hidden
    bytes_accessed = int((xk.size + xq.size + B * Nq * out_dim) * 4
                         + 2 * (wq.size + wkv.size + wp.size + w1.size + w2.size))

    return pl.pallas_call(
        kernel,
        out_shape=jax.ShapeDtypeStruct((B, Nq, out_dim), xq.dtype),
        grid_spec=pltpu.PrefetchScalarGridSpec(
            num_scalar_prefetch=0,
            grid=grid,
            in_specs=in_specs,
            out_specs=pl.BlockSpec((block_b, Nq, out_dim), lambda b: (b, 0, 0)),
        ),
        compiler_params=pltpu.CompilerParams(
            dimension_semantics=("parallel",),
            vmem_limit_bytes=64 * 1024 * 1024,
        ),
        cost_estimate=pl.CostEstimate(flops=flops,
                                      transcendentals=transcendentals,
                                      bytes_accessed=bytes_accessed),
    )(xk, xq,
      params["gk"], params["bk"], params["gq"], params["bq"],
      wq, wkv, wp, params["bp"],
      params["g2"], params["b2"],
      w1, params["bfc1"], w2, params["bfc2"])


# ---------------------------------------------------------------------------
# Pure-JAX reference (mirrors the PyTorch forward pass) for validation.
# ---------------------------------------------------------------------------
def reference(xk, xq, params, num_heads):
    def ln(x, g, b, eps=1e-5):
        mu = x.mean(-1, keepdims=True)
        var = ((x - mu) ** 2).mean(-1, keepdims=True)
        return (x - mu) / jnp.sqrt(var + eps) * g + b

    B, Nk, _ = xk.shape
    _, Nq, _ = xq.shape
    out_dim = params["wq"].shape[1]
    head_dim = out_dim // num_heads

    xk_n = ln(xk, params["gk"][0], params["bk"][0])
    xq_n = ln(xq, params["gq"][0], params["bq"][0])

    q = xq_n @ params["wq"]
    kv = xk_n @ params["wkv"]
    k, v = kv[..., :out_dim], kv[..., out_dim:]

    q = q.reshape(B, Nq, num_heads, head_dim).transpose(0, 2, 1, 3)
    k = k.reshape(B, Nk, num_heads, head_dim).transpose(0, 2, 1, 3)
    v = v.reshape(B, Nk, num_heads, head_dim).transpose(0, 2, 1, 3)

    attn = jnp.einsum("bhqd,bhkd->bhqk", q, k) * head_dim ** (-0.5)
    attn = jax.nn.softmax(attn, axis=-1)
    o = jnp.einsum("bhqk,bhkd->bhqd", attn, v).transpose(0, 2, 1, 3).reshape(B, Nq, out_dim)

    x = o @ params["wp"] + params["bp"][0]
    xn = ln(x, params["g2"][0], params["b2"][0])
    h = jax.nn.gelu(xn @ params["w1"] + params["bfc1"][0], approximate=False)
    h = h @ params["w2"] + params["bfc2"][0]
    return x + h


if __name__ == "__main__":
    # Small, module-consistent shapes.
    B, Nk, Nq = 2, 16, 8
    in_dim_k, in_dim_q, out_dim = 32, 48, 32
    num_heads, mlp_ratio = 4, 2.0
    hidden = int(out_dim * mlp_ratio)

    key = jax.random.PRNGKey(0)
    keys = jax.random.split(key, 16)

    def nrm(k, shape, s=0.05):
        return (s * jax.random.normal(k, shape)).astype(jnp.float32)

    params = {
        # LayerNorm params kept as (1, C) rows for lane-friendly broadcasting.
        "gk": 1.0 + nrm(keys[0], (1, in_dim_k), 0.1),
        "bk": nrm(keys[1], (1, in_dim_k), 0.1),
        "gq": 1.0 + nrm(keys[2], (1, in_dim_q), 0.1),
        "bq": nrm(keys[3], (1, in_dim_q), 0.1),
        "wq": nrm(keys[4], (in_dim_q, out_dim)),
        "wkv": nrm(keys[5], (in_dim_k, 2 * out_dim)),
        "wp": nrm(keys[6], (out_dim, out_dim)),
        "bp": nrm(keys[7], (1, out_dim)),
        "g2": 1.0 + nrm(keys[8], (1, out_dim), 0.1),
        "b2": nrm(keys[9], (1, out_dim), 0.1),
        "w1": nrm(keys[10], (out_dim, hidden)),
        "bfc1": nrm(keys[11], (1, hidden)),
        "w2": nrm(keys[12], (hidden, out_dim)),
        "bfc2": nrm(keys[13], (1, out_dim)),
    }

    xk = jax.random.normal(keys[14], (B, Nk, in_dim_k), dtype=jnp.float32)
    xq = jax.random.normal(keys[15], (B, Nq, in_dim_q), dtype=jnp.float32)

    out = jax.block_until_ready(attention_block(xk, xq, params, num_heads=num_heads))
    ref = jax.block_until_ready(reference(xk, xq, params, num_heads))

    assert out.shape == (B, Nq, out_dim), out.shape
    err = float(jnp.max(jnp.abs(out - ref)))
    assert jnp.allclose(out, ref, atol=2e-2, rtol=2e-2), err
    print("KERNEL_OK")
</pallas_src>

<mosaic_0001>
module attributes {stable_mosaic.version = 11 : i64} {
  func.func @attention_block_kernel(%arg0: i32, %arg1: memref<1x16x32xf32, #tpu.memory_space<vmem>>, %arg2: memref<1x8x48xf32, #tpu.memory_space<vmem>>, %arg3: memref<1x32xf32, #tpu.memory_space<vmem>>, %arg4: memref<1x32xf32, #tpu.memory_space<vmem>>, %arg5: memref<1x48xf32, #tpu.memory_space<vmem>>, %arg6: memref<1x48xf32, #tpu.memory_space<vmem>>, %arg7: memref<48x32xbf16, #tpu.memory_space<vmem>>, %arg8: memref<32x64xbf16, #tpu.memory_space<vmem>>, %arg9: memref<32x32xbf16, #tpu.memory_space<vmem>>, %arg10: memref<1x32xf32, #tpu.memory_space<vmem>>, %arg11: memref<1x32xf32, #tpu.memory_space<vmem>>, %arg12: memref<1x32xf32, #tpu.memory_space<vmem>>, %arg13: memref<32x64xbf16, #tpu.memory_space<vmem>>, %arg14: memref<1x64xf32, #tpu.memory_space<vmem>>, %arg15: memref<64x32xbf16, #tpu.memory_space<vmem>>, %arg16: memref<1x32xf32, #tpu.memory_space<vmem>>, %arg17: memref<1x8x32xf32, #tpu.memory_space<vmem>>) attributes {dimension_semantics = [#tpu.dimension_semantics<parallel>], iteration_bounds = array<i64: 2>, scalar_prefetch = 0 : i64, scratch_operands = 0 : i64, tpu.core_type = #tpu.core_type<tc>, window_params = [{transform_indices = @transform_0, window_bounds = array<i64: 1, 16, 32>}, {transform_indices = @transform_1, window_bounds = array<i64: 1, 8, 48>}, {pipeline_mode = #tpu.pipeline_mode<synchronous>, transform_indices = @transform_2, window_bounds = array<i64: 1, 32>}, {pipeline_mode = #tpu.pipeline_mode<synchronous>, transform_indices = @transform_3, window_bounds = array<i64: 1, 32>}, {pipeline_mode = #tpu.pipeline_mode<synchronous>, transform_indices = @transform_4, window_bounds = array<i64: 1, 48>}, {pipeline_mode = #tpu.pipeline_mode<synchronous>, transform_indices = @transform_5, window_bounds = array<i64: 1, 48>}, {pipeline_mode = #tpu.pipeline_mode<synchronous>, transform_indices = @transform_6, window_bounds = array<i64: 48, 32>}, {pipeline_mode = #tpu.pipeline_mode<synchronous>, transform_indices = @transform_7, window_bounds = array<i64: 32, 64>}, {pipeline_mode = #tpu.pipeline_mode<synchronous>, transform_indices = @transform_8, window_bounds = array<i64: 32, 32>}, {pipeline_mode = #tpu.pipeline_mode<synchronous>, transform_indices = @transform_9, window_bounds = array<i64: 1, 32>}, {pipeline_mode = #tpu.pipeline_mode<synchronous>, transform_indices = @transform_10, window_bounds = array<i64: 1, 32>}, {pipeline_mode = #tpu.pipeline_mode<synchronous>, transform_indices = @transform_11, window_bounds = array<i64: 1, 32>}, {pipeline_mode = #tpu.pipeline_mode<synchronous>, transform_indices = @transform_12, window_bounds = array<i64: 32, 64>}, {pipeline_mode = #tpu.pipeline_mode<synchronous>, transform_indices = @transform_13, window_bounds = array<i64: 1, 64>}, {pipeline_mode = #tpu.pipeline_mode<synchronous>, transform_indices = @transform_14, window_bounds = array<i64: 64, 32>}, {pipeline_mode = #tpu.pipeline_mode<synchronous>, transform_indices = @transform_15, window_bounds = array<i64: 1, 32>}, {transform_indices = @transform_16, window_bounds = array<i64: 1, 8, 32>}]} {
    %c0 = arith.constant 0 : index
    %c0_0 = arith.constant 0 : index
    %c0_1 = arith.constant 0 : index
    %0 = vector.load %arg1[%c0, %c0_0, %c0_1] : memref<1x16x32xf32, #tpu.memory_space<vmem>>, vector<1x16x32xf32>
    %1 = vector.shape_cast %0 : vector<1x16x32xf32> to vector<16x32xf32>
    %c0_2 = arith.constant 0 : index
    %c0_3 = arith.constant 0 : index
    %2 = vector.load %arg3[%c0_2, %c0_3] : memref<1x32xf32, #tpu.memory_space<vmem>>, vector<1x32xf32>
    %c0_4 = arith.constant 0 : index
    %c0_5 = arith.constant 0 : index
    %3 = vector.load %arg4[%c0_4, %c0_5] : memref<1x32xf32, #tpu.memory_space<vmem>>, vector<1x32xf32>
    %cst = arith.constant dense<0.000000e+00> : vector<16xf32>
    %4 = vector.multi_reduction <add>, %1, %cst [1] : vector<16x32xf32> to vector<16xf32>
    %5 = vector.shape_cast %4 : vector<16xf32> to vector<16x1xf32>
    %cst_6 = arith.constant 3.200000e+01 : f32
    %6 = vector.broadcast %cst_6 : f32 to vector<16x1xf32>
    %7 = arith.divf %5, %6 : vector<16x1xf32>
    %8 = arith.mulf %1, %1 : vector<16x32xf32>
    %cst_7 = arith.constant dense<0.000000e+00> : vector<16xf32>
    %9 = vector.multi_reduction <add>, %8, %cst_7 [1] : vector<16x32xf32> to vector<16xf32>
    %10 = vector.shape_cast %9 : vector<16xf32> to vector<16x1xf32>
    %cst_8 = arith.constant 3.200000e+01 : f32
    %11 = vector.broadcast %cst_8 : f32 to vector<16x1xf32>
    %12 = arith.divf %10, %11 : vector<16x1xf32>
    %13 = arith.mulf %7, %7 : vector<16x1xf32>
    %14 = arith.subf %12, %13 : vector<16x1xf32>
    %cst_9 = arith.constant 0.000000e+00 : f32
    %15 = vector.broadcast %cst_9 : f32 to vector<16x1xf32>
    %16 = arith.maximumf %14, %15 : vector<16x1xf32>
    %17 = vector.broadcast %7 : vector<16x1xf32> to vector<16x32xf32>
    %18 = arith.subf %1, %17 : vector<16x32xf32>
    %cst_10 = arith.constant 9.99999974E-6 : f32
    %19 = vector.broadcast %cst_10 : f32 to vector<16x1xf32>
    %20 = arith.addf %16, %19 : vector<16x1xf32>
    %21 = math.rsqrt %20 : vector<16x1xf32>
    %22 = vector.broadcast %21 : vector<16x1xf32> to vector<16x32xf32>
    %23 = arith.mulf %18, %22 : vector<16x32xf32>
    %24 = vector.broadcast %2 : vector<1x32xf32> to vector<16x32xf32>
    %25 = arith.mulf %23, %24 : vector<16x32xf32>
    %26 = vector.broadcast %3 : vector<1x32xf32> to vector<16x32xf32>
    %27 = arith.addf %25, %26 : vector<16x32xf32>
    %c0_11 = arith.constant 0 : index
    %c0_12 = arith.constant 0 : index
    %c0_13 = arith.constant 0 : index
    %28 = vector.load %arg2[%c0_11, %c0_12, %c0_13] : memref<1x8x48xf32, #tpu.memory_space<vmem>>, vector<1x8x48xf32>
    %29 = vector.shape_cast %28 : vector<1x8x48xf32> to vector<8x48xf32>
    %c0_14 = arith.constant 0 : index
    %c0_15 = arith.constant 0 : index
    %30 = vector.load %arg5[%c0_14, %c0_15] : memref<1x48xf32, #tpu.memory_space<vmem>>, vector<1x48xf32>
    %c0_16 = arith.constant 0 : index
    %c0_17 = arith.constant 0 : index
    %31 = vector.load %arg6[%c0_16, %c0_17] : memref<1x48xf32, #tpu.memory_space<vmem>>, vector<1x48xf32>
    %cst_18 = arith.constant dense<0.000000e+00> : vector<8xf32>
    %32 = vector.multi_reduction <add>, %29, %cst_18 [1] : vector<8x48xf32> to vector<8xf32>
    %33 = vector.shape_cast %32 : vector<8xf32> to vector<8x1xf32>
    %cst_19 = arith.constant 4.800000e+01 : f32
    %34 = vector.broadcast %cst_19 : f32 to vector<8x1xf32>
    %35 = arith.divf %33, %34 : vector<8x1xf32>
    %36 = arith.mulf %29, %29 : vector<8x48xf32>
    %cst_20 = arith.constant dense<0.000000e+00> : vector<8xf32>
    %37 = vector.multi_reduction <add>, %36, %cst_20 [1] : vector<8x48xf32> to vector<8xf32>
    %38 = vector.shape_cast %37 : vector<8xf32> to vector<8x1xf32>
    %cst_21 = arith.constant 4.800000e+01 : f32
    %39 = vector.broadcast %cst_21 : f32 to vector<8x1xf32>
    %40 = arith.divf %38, %39 : vector<8x1xf32>
    %41 = arith.mulf %35, %35 : vector<8x1xf32>
    %42 = arith.subf %40, %41 : vector<8x1xf32>
    %cst_22 = arith.constant 0.000000e+00 : f32
    %43 = vector.broadcast %cst_22 : f32 to vector<8x1xf32>
    %44 = arith.maximumf %42, %43 : vector<8x1xf32>
    %45 = vector.broadcast %35 : vector<8x1xf32> to vector<8x48xf32>
    %46 = arith.subf %29, %45 : vector<8x48xf32>
    %cst_23 = arith.constant 9.99999974E-6 : f32
    %47 = vector.broadcast %cst_23 : f32 to vector<8x1xf32>
    %48 = arith.addf %44, %47 : vector<8x1xf32>
    %49 = math.rsqrt %48 : vector<8x1xf32>
    %50 = vector.broadcast %49 : vector<8x1xf32> to vector<8x48xf32>
    %51 = arith.mulf %46, %50 : vector<8x48xf32>
    %52 = vector.broadcast %30 : vector<1x48xf32> to vector<8x48xf32>
    %53 = arith.mulf %51, %52 : vector<8x48xf32>
    %54 = vector.broadcast %31 : vector<1x48xf32> to vector<8x48xf32>
    %55 = arith.addf %53, %54 : vector<8x48xf32>
    %56 = arith.truncf %55 : vector<8x48xf32> to vector<8x48xbf16>
    %c0_24 = arith.constant 0 : index
    %c0_25 = arith.constant 0 : index
    %57 = vector.load %arg7[%c0_24, %c0_25] : memref<48x32xbf16, #tpu.memory_space<vmem>>, vector<48x32xbf16>
    %cst_26 = arith.constant dense<0.000000e+00> : vector<8x32xf32>
    %58 = tpu.matmul %56, %57, %cst_26 {dimension_numbers = #tpu.dot_dimension_numbers<[1], [0], [0], [1], [0, 0, 1, 1], [], []>} : vector<8x48xbf16>, vector<48x32xbf16>, vector<8x32xf32> -> vector<8x32xf32>
    %59 = arith.truncf %27 : vector<16x32xf32> to vector<16x32xbf16>
    %c0_27 = arith.constant 0 : index
    %c0_28 = arith.constant 0 : index
    %60 = vector.load %arg8[%c0_27, %c0_28] : memref<32x64xbf16, #tpu.memory_space<vmem>>, vector<32x64xbf16>
    %cst_29 = arith.constant dense<0.000000e+00> : vector<16x64xf32>
    %61 = tpu.matmul %59, %60, %cst_29 {dimension_numbers = #tpu.dot_dimension_numbers<[1], [0], [0], [1], [0, 0, 1, 1], [], []>} : vector<16x32xbf16>, vector<32x64xbf16>, vector<16x64xf32> -> vector<16x64xf32>
    %62 = arith.truncf %58 : vector<8x32xf32> to vector<8x32xbf16>
    %63 = arith.truncf %61 : vector<16x64xf32> to vector<16x64xbf16>
    %64 = vector.extract_strided_slice %62 {offsets = [0, 0], sizes = [8, 8], strides = [1, 1]} : vector<8x32xbf16> to vector<8x8xbf16>
    %65 = vector.extract_strided_slice %63 {offsets = [0, 0], sizes = [16, 8], strides = [1, 1]} : vector<16x64xbf16> to vector<16x8xbf16>
    %66 = vector.extract_strided_slice %63 {offsets = [0, 32], sizes = [16, 8], strides = [1, 1]} : vector<16x64xbf16> to vector<16x8xbf16>
    "tpu.trace_start"() <{level = 10 : i32, message = "qd,kd->qk"}> : () -> ()
    %cst_30 = arith.constant dense<0.000000e+00> : vector<8x16xf32>
    %67 = tpu.matmul %64, %65, %cst_30 {dimension_numbers = #tpu.dot_dimension_numbers<[1], [1], [0], [0], [0, 0, 1, 0], [], []>} : vector<8x8xbf16>, vector<16x8xbf16>, vector<8x16xf32> -> vector<8x16xf32>
    "tpu.trace_stop"() : () -> ()
    %cst_31 = arith.constant dense<0xFF800000> : vector<8xf32>
    %68 = vector.multi_reduction <maximumf>, %67, %cst_31 [1] : vector<8x16xf32> to vector<8xf32>
    %69 = vector.shape_cast %68 : vector<8xf32> to vector<8x1xf32>
    %70 = vector.broadcast %69 : vector<8x1xf32> to vector<8x16xf32>
    %71 = arith.subf %67, %70 : vector<8x16xf32>
    %72 = math.exp %71 : vector<8x16xf32>
    %cst_32 = arith.constant dense<0.000000e+00> : vector<8xf32>
    %73 = vector.multi_reduction <add>, %72, %cst_32 [1] : vector<8x16xf32> to vector<8xf32>
    %74 = vector.shape_cast %73 : vector<8xf32> to vector<8x1xf32>
    %75 = tpu.reciprocal %74 {approx = true} : vector<8x1xf32> -> vector<8x1xf32>
    %76 = vector.broadcast %75 : vector<8x1xf32> to vector<8x16xf32>
    %77 = arith.mulf %72, %76 : vector<8x16xf32>
    %78 = arith.truncf %77 : vector<8x16xf32> to vector<8x16xbf16>
    %cst_33 = arith.constant dense<0.000000e+00> : vector<8x8xf32>
    %79 = tpu.matmul %78, %66, %cst_33 {dimension_numbers = #tpu.dot_dimension_numbers<[1], [0], [0], [1], [0, 0, 1, 1], [], []>} : vector<8x16xbf16>, vector<16x8xbf16>, vector<8x8xf32> -> vector<8x8xf32>
    %80 = vector.extract_strided_slice %62 {offsets = [0, 8], sizes = [8, 8], strides = [1, 1]} : vector<8x32xbf16> to vector<8x8xbf16>
    %81 = vector.extract_strided_slice %63 {offsets = [0, 8], sizes = [16, 8], strides = [1, 1]} : vector<16x64xbf16> to vector<16x8xbf16>
    %82 = vector.extract_strided_slice %63 {offsets = [0, 40], sizes = [16, 8], strides = [1, 1]} : vector<16x64xbf16> to vector<16x8xbf16>
    "tpu.trace_start"() <{level = 10 : i32, message = "qd,kd->qk"}> : () -> ()
    %cst_34 = arith.constant dense<0.000000e+00> : vector<8x16xf32>
    %83 = tpu.matmul %80, %81, %cst_34 {dimension_numbers = #tpu.dot_dimension_numbers<[1], [1], [0], [0], [0, 0, 1, 0], [], []>} : vector<8x8xbf16>, vector<16x8xbf16>, vector<8x16xf32> -> vector<8x16xf32>
    "tpu.trace_stop"() : () -> ()
    %cst_35 = arith.constant dense<0xFF800000> : vector<8xf32>
    %84 = vector.multi_reduction <maximumf>, %83, %cst_35 [1] : vector<8x16xf32> to vector<8xf32>
    %85 = vector.shape_cast %84 : vector<8xf32> to vector<8x1xf32>
    %86 = vector.broadcast %85 : vector<8x1xf32> to vector<8x16xf32>
    %87 = arith.subf %83, %86 : vector<8x16xf32>
    %88 = math.exp %87 : vector<8x16xf32>
    %cst_36 = arith.constant dense<0.000000e+00> : vector<8xf32>
    %89 = vector.multi_reduction <add>, %88, %cst_36 [1] : vector<8x16xf32> to vector<8xf32>
    %90 = vector.shape_cast %89 : vector<8xf32> to vector<8x1xf32>
    %91 = tpu.reciprocal %90 {approx = true} : vector<8x1xf32> -> vector<8x1xf32>
    %92 = vector.broadcast %91 : vector<8x1xf32> to vector<8x16xf32>
    %93 = arith.mulf %88, %92 : vector<8x16xf32>
    %94 = arith.truncf %93 : vector<8x16xf32> to vector<8x16xbf16>
    %cst_37 = arith.constant dense<0.000000e+00> : vector<8x8xf32>
    %95 = tpu.matmul %94, %82, %cst_37 {dimension_numbers = #tpu.dot_dimension_numbers<[1], [0], [0], [1], [0, 0, 1, 1], [], []>} : vector<8x16xbf16>, vector<16x8xbf16>, vector<8x8xf32> -> vector<8x8xf32>
    %96 = vector.extract_strided_slice %62 {offsets = [0, 16], sizes = [8, 8], strides = [1, 1]} : vector<8x32xbf16> to vector<8x8xbf16>
    %97 = vector.extract_strided_slice %63 {offsets = [0, 16], sizes = [16, 8], strides = [1, 1]} : vector<16x64xbf16> to vector<16x8xbf16>
    %98 = vector.extract_strided_slice %63 {offsets = [0, 48], sizes = [16, 8], strides = [1, 1]} : vector<16x64xbf16> to vector<16x8xbf16>
    "tpu.trace_start"() <{level = 10 : i32, message = "qd,kd->qk"}> : () -> ()
    %cst_38 = arith.constant dense<0.000000e+00> : vector<8x16xf32>
    %99 = tpu.matmul %96, %97, %cst_38 {dimension_numbers = #tpu.dot_dimension_numbers<[1], [1], [0], [0], [0, 0, 1, 0], [], []>} : vector<8x8xbf16>, vector<16x8xbf16>, vector<8x16xf32> -> vector<8x16xf32>
    "tpu.trace_stop"() : () -> ()
    %cst_39 = arith.constant dense<0xFF800000> : vector<8xf32>
    %100 = vector.multi_reduction <maximumf>, %99, %cst_39 [1] : vector<8x16xf32> to vector<8xf32>
    %101 = vector.shape_cast %100 : vector<8xf32> to vector<8x1xf32>
    %102 = vector.broadcast %101 : vector<8x1xf32> to vector<8x16xf32>
    %103 = arith.subf %99, %102 : vector<8x16xf32>
    %104 = math.exp %103 : vector<8x16xf32>
    %cst_40 = arith.constant dense<0.000000e+00> : vector<8xf32>
    %105 = vector.multi_reduction <add>, %104, %cst_40 [1] : vector<8x16xf32> to vector<8xf32>
    %106 = vector.shape_cast %105 : vector<8xf32> to vector<8x1xf32>
    %107 = tpu.reciprocal %106 {approx = true} : vector<8x1xf32> -> vector<8x1xf32>
    %108 = vector.broadcast %107 : vector<8x1xf32> to vector<8x16xf32>
    %109 = arith.mulf %104, %108 : vector<8x16xf32>
    %110 = arith.truncf %109 : vector<8x16xf32> to vector<8x16xbf16>
    %cst_41 = arith.constant dense<0.000000e+00> : vector<8x8xf32>
    %111 = tpu.matmul %110, %98, %cst_41 {dimension_numbers = #tpu.dot_dimension_numbers<[1], [0], [0], [1], [0, 0, 1, 1], [], []>} : vector<8x16xbf16>, vector<16x8xbf16>, vector<8x8xf32> -> vector<8x8xf32>
    %112 = vector.extract_strided_slice %62 {offsets = [0, 24], sizes = [8, 8], strides = [1, 1]} : vector<8x32xbf16> to vector<8x8xbf16>
    %113 = vector.extract_strided_slice %63 {offsets = [0, 24], sizes = [16, 8], strides = [1, 1]} : vector<16x64xbf16> to vector<16x8xbf16>
    %114 = vector.extract_strided_slice %63 {offsets = [0, 56], sizes = [16, 8], strides = [1, 1]} : vector<16x64xbf16> to vector<16x8xbf16>
    "tpu.trace_start"() <{level = 10 : i32, message = "qd,kd->qk"}> : () -> ()
    %cst_42 = arith.constant dense<0.000000e+00> : vector<8x16xf32>
    %115 = tpu.matmul %112, %113, %cst_42 {dimension_numbers = #tpu.dot_dimension_numbers<[1], [1], [0], [0], [0, 0, 1, 0], [], []>} : vector<8x8xbf16>, vector<16x8xbf16>, vector<8x16xf32> -> vector<8x16xf32>
    "tpu.trace_stop"() : () -> ()
    %cst_43 = arith.constant dense<0xFF800000> : vector<8xf32>
    %116 = vector.multi_reduction <maximumf>, %115, %cst_43 [1] : vector<8x16xf32> to vector<8xf32>
    %117 = vector.shape_cast %116 : vector<8xf32> to vector<8x1xf32>
    %118 = vector.broadcast %117 : vector<8x1xf32> to vector<8x16xf32>
    %119 = arith.subf %115, %118 : vector<8x16xf32>
    %120 = math.exp %119 : vector<8x16xf32>
    %cst_44 = arith.constant dense<0.000000e+00> : vector<8xf32>
    %121 = vector.multi_reduction <add>, %120, %cst_44 [1] : vector<8x16xf32> to vector<8xf32>
    %122 = vector.shape_cast %121 : vector<8xf32> to vector<8x1xf32>
    %123 = tpu.reciprocal %122 {approx = true} : vector<8x1xf32> -> vector<8x1xf32>
    %124 = vector.broadcast %123 : vector<8x1xf32> to vector<8x16xf32>
    %125 = arith.mulf %120, %124 : vector<8x16xf32>
    %126 = arith.truncf %125 : vector<8x16xf32> to vector<8x16xbf16>
    %cst_45 = arith.constant dense<0.000000e+00> : vector<8x8xf32>
    %127 = tpu.matmul %126, %114, %cst_45 {dimension_numbers = #tpu.dot_dimension_numbers<[1], [0], [0], [1], [0, 0, 1, 1], [], []>} : vector<8x16xbf16>, vector<16x8xbf16>, vector<8x8xf32> -> vector<8x8xf32>
    %128 = tpu.concatenate %79, %95, %111, %127 in 1 : vector<8x8xf32>, vector<8x8xf32>, vector<8x8xf32>, vector<8x8xf32> -> vector<8x32xf32>
    %129 = arith.truncf %128 : vector<8x32xf32> to vector<8x32xbf16>
    %c0_46 = arith.constant 0 : index
    %c0_47 = arith.constant 0 : index
    %130 = vector.load %arg9[%c0_46, %c0_47] : memref<32x32xbf16, #tpu.memory_space<vmem>>, vector<32x32xbf16>
    %cst_48 = arith.constant dense<0.000000e+00> : vector<8x32xf32>
    %131 = tpu.matmul %129, %130, %cst_48 {dimension_numbers = #tpu.dot_dimension_numbers<[1], [0], [0], [1], [0, 0, 1, 1], [], []>} : vector<8x32xbf16>, vector<32x32xbf16>, vector<8x32xf32> -> vector<8x32xf32>
    %c0_49 = arith.constant 0 : index
    %c0_50 = arith.constant 0 : index
    %132 = vector.load %arg10[%c0_49, %c0_50] : memref<1x32xf32, #tpu.memory_space<vmem>>, vector<1x32xf32>
    %133 = vector.broadcast %132 : vector<1x32xf32> to vector<8x32xf32>
    %134 = arith.addf %131, %133 : vector<8x32xf32>
    %c0_51 = arith.constant 0 : index
    %c0_52 = arith.constant 0 : index
    %135 = vector.load %arg11[%c0_51, %c0_52] : memref<1x32xf32, #tpu.memory_space<vmem>>, vector<1x32xf32>
    %c0_53 = arith.constant 0 : index
    %c0_54 = arith.constant 0 : index
    %136 = vector.load %arg12[%c0_53, %c0_54] : memref<1x32xf32, #tpu.memory_space<vmem>>, vector<1x32xf32>
    %cst_55 = arith.constant dense<0.000000e+00> : vector<8xf32>
    %137 = vector.multi_reduction <add>, %134, %cst_55 [1] : vector<8x32xf32> to vector<8xf32>
    %138 = vector.shape_cast %137 : vector<8xf32> to vector<8x1xf32>
    %cst_56 = arith.constant 3.200000e+01 : f32
    %139 = vector.broadcast %cst_56 : f32 to vector<8x1xf32>
    %140 = arith.divf %138, %139 : vector<8x1xf32>
    %141 = arith.mulf %134, %134 : vector<8x32xf32>
    %cst_57 = arith.constant dense<0.000000e+00> : vector<8xf32>
    %142 = vector.multi_reduction <add>, %141, %cst_57 [1] : vector<8x32xf32> to vector<8xf32>
    %143 = vector.shape_cast %142 : vector<8xf32> to vector<8x1xf32>
    %cst_58 = arith.constant 3.200000e+01 : f32
    %144 = vector.broadcast %cst_58 : f32 to vector<8x1xf32>
    %145 = arith.divf %143, %144 : vector<8x1xf32>
    %146 = arith.mulf %140, %140 : vector<8x1xf32>
    %147 = arith.subf %145, %146 : vector<8x1xf32>
    %cst_59 = arith.constant 0.000000e+00 : f32
    %148 = vector.broadcast %cst_59 : f32 to vector<8x1xf32>
    %149 = arith.maximumf %147, %148 : vector<8x1xf32>
    %150 = vector.broadcast %140 : vector<8x1xf32> to vector<8x32xf32>
    %151 = arith.subf %134, %150 : vector<8x32xf32>
    %cst_60 = arith.constant 9.99999974E-6 : f32
    %152 = vector.broadcast %cst_60 : f32 to vector<8x1xf32>
    %153 = arith.addf %149, %152 : vector<8x1xf32>
    %154 = math.rsqrt %153 : vector<8x1xf32>
    %155 = vector.broadcast %154 : vector<8x1xf32> to vector<8x32xf32>
    %156 = arith.mulf %151, %155 : vector<8x32xf32>
    %157 = vector.broadcast %135 : vector<1x32xf32> to vector<8x32xf32>
    %158 = arith.mulf %156, %157 : vector<8x32xf32>
    %159 = vector.broadcast %136 : vector<1x32xf32> to vector<8x32xf32>
    %160 = arith.addf %158, %159 : vector<8x32xf32>
    %161 = arith.truncf %160 : vector<8x32xf32> to vector<8x32xbf16>
    %c0_61 = arith.constant 0 : index
    %c0_62 = arith.constant 0 : index
    %162 = vector.load %arg13[%c0_61, %c0_62] : memref<32x64xbf16, #tpu.memory_space<vmem>>, vector<32x64xbf16>
    %cst_63 = arith.constant dense<0.000000e+00> : vector<8x64xf32>
    %163 = tpu.matmul %161, %162, %cst_63 {dimension_numbers = #tpu.dot_dimension_numbers<[1], [0], [0], [1], [0, 0, 1, 1], [], []>} : vector<8x32xbf16>, vector<32x64xbf16>, vector<8x64xf32> -> vector<8x64xf32>
    %c0_64 = arith.constant 0 : index
    %c0_65 = arith.constant 0 : index
    %164 = vector.load %arg14[%c0_64, %c0_65] : memref<1x64xf32, #tpu.memory_space<vmem>>, vector<1x64xf32>
    %165 = vector.broadcast %164 : vector<1x64xf32> to vector<8x64xf32>
    %166 = arith.addf %163, %165 : vector<8x64xf32>
    %cst_66 = arith.constant 5.000000e-01 : f32
    %167 = vector.broadcast %cst_66 : f32 to vector<8x64xf32>
    %168 = arith.mulf %167, %166 : vector<8x64xf32>
    %cst_67 = arith.constant 0.707106769 : f32
    %169 = vector.broadcast %cst_67 : f32 to vector<8x64xf32>
    %170 = arith.mulf %166, %169 : vector<8x64xf32>
    %171 = math.erf %170 : vector<8x64xf32>
    %cst_68 = arith.constant 1.000000e+00 : f32
    %172 = vector.broadcast %cst_68 : f32 to vector<8x64xf32>
    %173 = arith.addf %172, %171 : vector<8x64xf32>
    %174 = arith.mulf %168, %173 : vector<8x64xf32>
    %175 = arith.truncf %174 : vector<8x64xf32> to vector<8x64xbf16>
    %c0_69 = arith.constant 0 : index
    %c0_70 = arith.constant 0 : index
    %176 = vector.load %arg15[%c0_69, %c0_70] : memref<64x32xbf16, #tpu.memory_space<vmem>>, vector<64x32xbf16>
    %cst_71 = arith.constant dense<0.000000e+00> : vector<8x32xf32>
    %177 = tpu.matmul %175, %176, %cst_71 {dimension_numbers = #tpu.dot_dimension_numbers<[1], [0], [0], [1], [0, 0, 1, 1], [], []>} : vector<8x64xbf16>, vector<64x32xbf16>, vector<8x32xf32> -> vector<8x32xf32>
    %c0_72 = arith.constant 0 : index
    %c0_73 = arith.constant 0 : index
    %178 = vector.load %arg16[%c0_72, %c0_73] : memref<1x32xf32, #tpu.memory_space<vmem>>, vector<1x32xf32>
    %179 = vector.broadcast %178 : vector<1x32xf32> to vector<8x32xf32>
    %180 = arith.addf %177, %179 : vector<8x32xf32>
    %181 = arith.addf %134, %180 : vector<8x32xf32>
    %182 = vector.shape_cast %181 : vector<8x32xf32> to vector<1x8x32xf32>
    %c0_74 = arith.constant 0 : index
    %c0_75 = arith.constant 0 : index
    %c0_76 = arith.constant 0 : index
    %183 = vector.load %arg17[%c0_74, %c0_75, %c0_76] : memref<1x8x32xf32, #tpu.memory_space<vmem>>, vector<1x8x32xf32>
    tpu.vector_store %arg17[%c0_74, %c0_75, %c0_76], %182 {strides = array<i32>} : memref<1x8x32xf32, #tpu.memory_space<vmem>>, vector<1x8x32xf32>,
    return
  }
  func.func @transform_0(%arg0: i32) -> (i32, i32, i32) {
    %c0_i32 = arith.constant 0 : i32
    %c0_i32_0 = arith.constant 0 : i32
    %c0_i32_1 = arith.constant 0 : i32
    return %arg0, %c0_i32, %c0_i32_0 : i32, i32, i32
  }
  func.func @transform_1(%arg0: i32) -> (i32, i32, i32) {
    %c0_i32 = arith.constant 0 : i32
    %c0_i32_0 = arith.constant 0 : i32
    %c0_i32_1 = arith.constant 0 : i32
    return %arg0, %c0_i32, %c0_i32_0 : i32, i32, i32
  }
  func.func @transform_2(%arg0: i32) -> (i32, i32) {
    %c0_i32 = arith.constant 0 : i32
    %c0_i32_0 = arith.constant 0 : i32
    %c0_i32_1 = arith.constant 0 : i32
    return %c0_i32, %c0_i32_0 : i32, i32
  }
  func.func @transform_3(%arg0: i32) -> (i32, i32) {
    %c0_i32 = arith.constant 0 : i32
    %c0_i32_0 = arith.constant 0 : i32
    %c0_i32_1 = arith.constant 0 : i32
    return %c0_i32, %c0_i32_0 : i32, i32
  }
  func.func @transform_4(%arg0: i32) -> (i32, i32) {
    %c0_i32 = arith.constant 0 : i32
    %c0_i32_0 = arith.constant 0 : i32
    %c0_i32_1 = arith.constant 0 : i32
    return %c0_i32, %c0_i32_0 : i32, i32
  }
  func.func @transform_5(%arg0: i32) -> (i32, i32) {
    %c0_i32 = arith.constant 0 : i32
    %c0_i32_0 = arith.constant 0 : i32
    %c0_i32_1 = arith.constant 0 : i32
    return %c0_i32, %c0_i32_0 : i32, i32
  }
  func.func @transform_6(%arg0: i32) -> (i32, i32) {
    %c0_i32 = arith.constant 0 : i32
    %c0_i32_0 = arith.constant 0 : i32
    %c0_i32_1 = arith.constant 0 : i32
    return %c0_i32, %c0_i32_0 : i32, i32
  }
  func.func @transform_7(%arg0: i32) -> (i32, i32) {
    %c0_i32 = arith.constant 0 : i32
    %c0_i32_0 = arith.constant 0 : i32
    %c0_i32_1 = arith.constant 0 : i32
    return %c0_i32, %c0_i32_0 : i32, i32
  }
  func.func @transform_8(%arg0: i32) -> (i32, i32) {
    %c0_i32 = arith.constant 0 : i32
    %c0_i32_0 = arith.constant 0 : i32
    %c0_i32_1 = arith.constant 0 : i32
    return %c0_i32, %c0_i32_0 : i32, i32
  }
  func.func @transform_9(%arg0: i32) -> (i32, i32) {
    %c0_i32 = arith.constant 0 : i32
    %c0_i32_0 = arith.constant 0 : i32
    %c0_i32_1 = arith.constant 0 : i32
    return %c0_i32, %c0_i32_0 : i32, i32
  }
  func.func @transform_10(%arg0: i32) -> (i32, i32) {
    %c0_i32 = arith.constant 0 : i32
    %c0_i32_0 = arith.constant 0 : i32
    %c0_i32_1 = arith.constant 0 : i32
    return %c0_i32, %c0_i32_0 : i32, i32
  }
  func.func @transform_11(%arg0: i32) -> (i32, i32) {
    %c0_i32 = arith.constant 0 : i32
    %c0_i32_0 = arith.constant 0 : i32
    %c0_i32_1 = arith.constant 0 : i32
    return %c0_i32, %c0_i32_0 : i32, i32
  }
  func.func @transform_12(%arg0: i32) -> (i32, i32) {
    %c0_i32 = arith.constant 0 : i32
    %c0_i32_0 = arith.constant 0 : i32
    %c0_i32_1 = arith.constant 0 : i32
    return %c0_i32, %c0_i32_0 : i32, i32
  }
  func.func @transform_13(%arg0: i32) -> (i32, i32) {
    %c0_i32 = arith.constant 0 : i32
    %c0_i32_0 = arith.constant 0 : i32
    %c0_i32_1 = arith.constant 0 : i32
    return %c0_i32, %c0_i32_0 : i32, i32
  }
  func.func @transform_14(%arg0: i32) -> (i32, i32) {
    %c0_i32 = arith.constant 0 : i32
    %c0_i32_0 = arith.constant 0 : i32
    %c0_i32_1 = arith.constant 0 : i32
    return %c0_i32, %c0_i32_0 : i32, i32
  }
  func.func @transform_15(%arg0: i32) -> (i32, i32) {
    %c0_i32 = arith.constant 0 : i32
    %c0_i32_0 = arith.constant 0 : i32
    %c0_i32_1 = arith.constant 0 : i32
    return %c0_i32, %c0_i32_0 : i32, i32
  }
  func.func @transform_16(%arg0: i32) -> (i32, i32, i32) {
    %c0_i32 = arith.constant 0 : i32
    %c0_i32_0 = arith.constant 0 : i32
    %c0_i32_1 = arith.constant 0 : i32
    return %arg0, %c0_i32, %c0_i32_0 : i32, i32, i32
  }
}

</mosaic_0001>

<bundles_post_ra>
// kernel: tpu_custom_call.1
= control target key start
LH: loop header
LB: loop body
LE: loop exit
PB: predicated region body
PF: predicated region fallthrough
CT: control target
= control target key end

     0   :  { %s2779_s0 = inlined_call_operand.vmem [shape: f32[2,16,32], index: 0, kind: input, shape index: {}]   ;;  %s2780_s1 = inlined_call_operand.vmem [shape: f32[2,8,48], index: 1, kind: input, shape index: {}]   ;;  %s2781_s2 = inlined_call_operand.vmem [shape: f32[1,32], index: 2, kind: input, shape index: {}]   ;;  %s2782_s3 = inlined_call_operand.hbm [shape: f32[1,32], index: 3, kind: input, shape index: {}]   ;;  %s2783_s4 = inlined_call_operand.hbm [shape: f32[1,48], index: 4, kind: input, shape index: {}]   ;;  %s2784_s5 = inlined_call_operand.hbm [shape: f32[1,48], index: 5, kind: input, shape index: {}]   ;;  %s2785_s6 = inlined_call_operand.vmem [shape: bf16[48,32], index: 6, kind: input, shape index: {}]   ;;  %s2786_s7 = inlined_call_operand.vmem [shape: bf16[32,64], index: 7, kind: input, shape index: {}]   ;;  %s2787_s8 = inlined_call_operand.vmem [shape: bf16[32,32], index: 8, kind: input, shape index: {}]   ;;  %s2788_s9 = inlined_call_operand.hbm [shape: f32[1,32], index: 9, kind: input, shape index: {}]   ;;  %s2789_s10 = inlined_call_operand.hbm [shape: f32[1,32], index: 10, kind: input, shape index: {}]   ;;  %s2790_s11 = inlined_call_operand.hbm [shape: f32[1,32], index: 11, kind: input, shape index: {}]   ;;  %s2791_s12 = inlined_call_operand.vmem [shape: bf16[32,64], index: 12, kind: input, shape index: {}]   ;;  %s2792_s13 = inlined_call_operand.hbm [shape: f32[1,64], index: 13, kind: input, shape index: {}]   ;;  %s2793_s14 = inlined_call_operand.vmem [shape: bf16[64,32], index: 14, kind: input, shape index: {}]   ;;  %s2794_s15 = inlined_call_operand.vmem [shape: f32[1,32], index: 15, kind: input, shape index: {}]   ;;  %s2795_s16 = inlined_call_operand.hbm [shape: f32[2,8,32], index: 16, kind: output, shape index: {}]  }
   0x1   :  { %2805 = sst [smem:[#allocation26_spill]] %s2779_s0 }
   0x2   :  { %2806 = sst [smem:[#allocation27_spill]] %s2783_s4 }
   0x3   :  { %21 = vsyncpa [#allocation3], 0 }
   0x4   :  { %22 = vsyncpa [#allocation6], 0 }
   0x5   :  { %23 = vsyncpa [#allocation9], 0 }
   0x6   :  { %24 = vsyncpa [#allocation12], 0 }
   0x7   :  { %25 = vsyncpa [#allocation4], 0 }
   0x8   :  { %27 = vsyncpa [#allocation4 + $0x1], 0  ;;  %s2421_s21 = smov 0   ;;  %s2423_s22 = smov 0  }
   0x9   :  { %s2425_s23 = smov 0   ;;  %s2427_s24 = smov 0  }
   0xa LB: > { %2807 = sst [smem:[#allocation20_spill]] %s2302_s21  ;;  %s2442_s25 = sadd.s32 4294967295, %s2314_s24   ;;  %s2314_s24 = sphi %s2427_s24, %s2834_s24   ;;  %s2310_s23 = sphi %s2425_s23, %s2836_s23   ;;  %s2306_s22 = sphi %s2423_s22, %s2838_s22   ;;  %s2302_s21 = sphi %s2421_s21, %s2837_s21  }
   0xb   : > { %2808 = sst [smem:[#allocation21_spill]] %s2310_s23  ;;  %s1705_s26 = sadd.s32 4294967294, %s2314_s24  }
   0xc   : > { %2809 = sst [smem:[#allocation22_spill]] %s2314_s24  ;;  %s2446_s27 = sadd.s32 1, %s2314_s24  }
   0xd   : > { %2810 = sst [smem:[#allocation23_spill]] %s2446_s27  ;;  %s386_s28 = sadd.s32 1, %s2310_s23 }
   0xe   : > { %s383_s29 = ssub.s32 %s2314_s24, %s2446_s27  ;;  %p396_p0 = scmp.ne.s32.totalorder %s2310_s23, %s2306_s22 }
   0xf   : > { %p384_p1 = scmp.eq.s32.totalorder %s383_s29, 0  ;;  %p397_p2 = scmp.eq.s32.totalorder %s2442_s25, 1 }
  0x10   : > { %p402_p3 = scmp.ne.s32.totalorder %s2306_s22, %s2302_s21  ;;  %p403_p4 = scmp.eq.s32.totalorder %s1705_s26, 1 }
  0x11   : > { %s2457_s30 = scalar_select %p384_p1, %s2310_s23, %s386_s28  }
  0x12   : > { %p2459_p5 = por %p397_p2, %p396_p0  ;;  %p2463_p6 = por %p403_p4, %p402_p3 }
  0x13   : > { %2811 = sst [smem:[#allocation24_spill]] %s2457_s30  ;;  %p1706_p7 = scmp.ge.s32.totalorder %s2314_s24, 1 }
  0x14   : > { %s2812_s0 = scalar_select %p2459_p5, 1, 0 }
  0x15   : > { %s2813_s17 = scalar_select %p2463_p6, 1, 0 }
  0x16   : > { %p410_p8 = scmp.lt.s32.totalorder %s2314_s24, 3  ;;  %p2801_p9 = scmp.eq.s32.totalorder %s2442_s25, 0 }
  0x17   : > { %2814 = sst [smem:[#allocation25_spill]] %s2813_s17  ;;  %s2316_s19 = smov [#allocation5]  }
  0x18   : > { %p2470_p10 = pnand %p1706_p7, %p410_p8  ;;  %s437_s20 = sshll.u32 %s2316_s19, 4  ;;  %s438_s20 = int_to_ptr.vmem [resolvable:$true] %s437_s20 }
  0x19   : > { %s2317_s26 = smov [#allocation8]   ;;  %s2318_s30 = smov [#allocation11]  }
  0x1a   : > { %s2815_s18 = scalar_select %p2470_p10, 1, 0 }
  0x1b   : > { %p1925_p11 = pneg %p2470_p10  ;;  %s468_s28 = sshll.u32 %s2317_s26, 4  ;;  %s469_s28 = int_to_ptr.vmem [resolvable:$true] %s468_s28 }
  0x1c   : > { %s490_s23 = sshll.u32 %s2318_s30, 4  ;;  %s2067_s19 = scalar_lea.vmem %s438_s20, 16  ;;  %s2482_s23 = int_to_ptr.vmem [resolvable:$true] %s490_s23 }
  0x1d   : > { %p2478_p12 = pnand %p2801_p9, %p1925_p11  ;;  %p2068_p0 = scmp.ne.s32.totalorder %s438_s20, %s2067_s19 }
  0x1e   : > { %s2074_s26 = scalar_lea.vmem %s438_s20, 32  ;;  %p2075_p3 = scmp.lt.s32.totalorder %s438_s20, %s438_s20 }
  0x1f   : > { %p2486_p13 = pneg %p2478_p12  ;;  %p2076_p4 = scmp.lt.s32.totalorder %s2074_s26, %s2067_s19 }
  0x21   : > { %p2070_p1 = pnand %p2068_p0, %p2486_p13  ;;  %p2077_p7 = por %p2076_p4, %p2075_p3 }
  0x23   : > { %p2071_p2 = pneg %p2070_p1 }
  0x25   : > { %p2078_p8 = pnand %p2077_p7, %p2071_p2 }
  0x27   : > { %2081 = shalt.err (!%p2078_p8)
}
  0x28   : > { %s2818_s4 = sld [smem:[#allocation27_spill]]  ;;  %s2093_s21 = scalar_lea.vmem %s469_s28, 16 }
  0x29   : > { %p2094_p11 = scmp.ne.s32.totalorder %s469_s28, %s2093_s21  ;;  %s2100_s24 = scalar_lea.vmem %s469_s28, 32 }
  0x2a   : > { %p2101_p0 = scmp.lt.s32.totalorder %s469_s28, %s469_s28  ;;  %p2102_p1 = scmp.lt.s32.totalorder %s2100_s24, %s2093_s21 }
  0x2b   : > { %p2096_p9 = pnand %p2094_p11, %p2486_p13 }
  0x2c   : > { %p2103_p5 = por %p2102_p1, %p2101_p0 }
  0x2d   : > { %p2097_p6 = pneg %p2096_p9 }
  0x2e   : > { %1931 = dma.hbm_to_vmem [thread:$0]  (!%p2478_p12), %s2818_s4, 16, %s438_s20, [#allocation6]  }
  0x2f   : > { %p2104_p10 = pnand %p2103_p5, %p2097_p6 }
  0x31   : > { %2107 = shalt.err (!%p2104_p10)
}
  0x32   : > { %1937 = dma.hbm_to_vmem [thread:$0]  (!%p2478_p12), %s2788_s9, 16, %s469_s28, [#allocation9]  }
  0x33   : > { %s2119_s17 = scalar_lea.vmem %s2482_s23, 16  ;;  %s2126_s21 = scalar_lea.vmem %s2482_s23, 32 }
  0x34   : > { %p2120_p2 = scmp.ne.s32.totalorder %s2482_s23, %s2119_s17  ;;  %p2127_p5 = scmp.lt.s32.totalorder %s2482_s23, %s2482_s23 }
  0x35   : > { %p2128_p6 = scmp.lt.s32.totalorder %s2126_s21, %s2119_s17 }
  0x36   : > { %p2122_p9 = pnand %p2120_p2, %p2486_p13 }
  0x37   : > { %p2129_p10 = por %p2128_p6, %p2127_p5 }
  0x38   : > { %p2123_p3 = pneg %p2122_p9 }
  0x3a   : > { %p2130_p4 = pnand %p2129_p10, %p2123_p3 }
  0x3c   : > { %2133 = shalt.err (!%p2130_p4)
}
  0x3d   : > { %1943 = dma.hbm_to_vmem [thread:$0]  (!%p2478_p12), %s2790_s11, 16, %s2482_s23, [#allocation12]  }
  0x3e   : > { %s2319_s28 = smov [#allocation2]   ;;  %s2320_s19 = smov [#allocation7]  }
  0x3f   : > { %s426_s30 = sshll.u32 %s2319_s28, 4  ;;  %s448_s26 = sshll.u32 %s2320_s19, 4  ;;  %s427_s30 = int_to_ptr.vmem [resolvable:$true] %s426_s30  ;;  %s449_s26 = int_to_ptr.vmem [resolvable:$true] %s448_s26 }
  0x40   : > { %s2145_s4 = scalar_lea.vmem %s427_s30, 16  ;;  %s2152_s17 = scalar_lea.vmem %s427_s30, 32 }
  0x41   : > { %p2146_p7 = scmp.ne.s32.totalorder %s427_s30, %s2145_s4  ;;  %p2153_p0 = scmp.lt.s32.totalorder %s427_s30, %s427_s30 }
  0x42   : > { %p2154_p1 = scmp.lt.s32.totalorder %s2152_s17, %s2145_s4 }
  0x43   : > { %p2148_p8 = pnand %p2146_p7, %p2486_p13 }
  0x44   : > { %p2155_p2 = por %p2154_p1, %p2153_p0 }
  0x45   : > { %p2149_p11 = pneg %p2148_p8 }
  0x47   : > { %p2156_p9 = pnand %p2155_p2, %p2149_p11 }
  0x49   : > { %2159 = shalt.err (!%p2156_p9)
}
  0x4a   : > { %1928 = dma.hbm_to_vmem [thread:$0]  (!%p2478_p12), %s2782_s3, 16, %s427_s30, [#allocation3]  }
  0x4b   : > { %s2171_s24 = scalar_lea.vmem %s449_s26, 16  ;;  %s2178_s20 = scalar_lea.vmem %s449_s26, 32 }
  0x4c   : > { %p2172_p3 = scmp.ne.s32.totalorder %s449_s26, %s2171_s24  ;;  %p2179_p10 = scmp.lt.s32.totalorder %s449_s26, %s449_s26 }
  0x4d   : > { %p2180_p4 = scmp.lt.s32.totalorder %s2178_s20, %s2171_s24 }
  0x4e   : > { %p2174_p5 = pnand %p2172_p3, %p2486_p13 }
  0x4f   : > { %p2181_p7 = por %p2180_p4, %p2179_p10 }
  0x50   : > { %p2175_p6 = pneg %p2174_p5 }
  0x52   : > { %p2182_p8 = pnand %p2181_p7, %p2175_p6 }
  0x54   : > { %2185 = shalt.err (!%p2182_p8)
}
  0x55   : > { %1934 = dma.hbm_to_vmem [thread:$0]  (!%p2478_p12), %s2784_s5, 16, %s449_s26, [#allocation6]  }
  0x56   : > { %s2321_s30 = smov [#allocation10]   ;;  %s2322_s17 = smov [#allocation13]  }
  0x57   : > { %s479_s19 = sshll.u32 %s2321_s30, 4  ;;  %s504_s21 = sshll.u32 %s2322_s17, 4  ;;  %s480_s19 = int_to_ptr.vmem [resolvable:$true] %s479_s19  ;;  %s505_s21 = int_to_ptr.vmem [resolvable:$true] %s504_s21 }
  0x58   : > { %s2197_s23 = scalar_lea.vmem %s480_s19, 16  ;;  %s2204_s24 = scalar_lea.vmem %s480_s19, 32 }
  0x59   : > { %p2198_p11 = scmp.ne.s32.totalorder %s480_s19, %s2197_s23  ;;  %p2205_p2 = scmp.lt.s32.totalorder %s480_s19, %s480_s19 }
  0x5a   : > { %p2206_p9 = scmp.lt.s32.totalorder %s2204_s24, %s2197_s23 }
  0x5b   : > { %p2200_p0 = pnand %p2198_p11, %p2486_p13 }
  0x5c   : > { %p2207_p3 = por %p2206_p9, %p2205_p2 }
  0x5d   : > { %p2201_p1 = pneg %p2200_p0 }
  0x5f   : > { %p2208_p5 = pnand %p2207_p3, %p2201_p1 }
  0x61   : > { %2211 = shalt.err (!%p2208_p5)
}
  0x62   : > { %1940 = dma.hbm_to_vmem [thread:$0]  (!%p2478_p12), %s2789_s10, 16, %s480_s19, [#allocation9]  }
  0x63   : > { %s2223_s4 = scalar_lea.vmem %s505_s21, 16  ;;  %s2230_s28 = scalar_lea.vmem %s505_s21, 32 }
  0x64   : > { %p2224_p6 = scmp.ne.s32.totalorder %s505_s21, %s2223_s4  ;;  %p2231_p7 = scmp.lt.s32.totalorder %s505_s21, %s505_s21 }
  0x65   : > { %p2232_p8 = scmp.lt.s32.totalorder %s2230_s28, %s2223_s4 }
  0x66   : > { %p2226_p10 = pnand %p2224_p6, %p2486_p13 }
  0x67   : > { %p2233_p11 = por %p2232_p8, %p2231_p7 }
  0x68   : > { %p2227_p4 = pneg %p2226_p10 }
  0x6a   : > { %p2234_p0 = pnand %p2233_p11, %p2227_p4 }
  0x6c   : > { %2237 = shalt.err (!%p2234_p0)
}
  0x6d   : > { %1946 = dma.hbm_to_vmem [thread:$0]  (!%p2478_p12), %s2792_s13, 16, %s505_s21, [#allocation12]  }
  0x6e   : > { %p2819_p1 = scmp.ne.s32.totalorder %s2815_s18, 0 }
  0x6f   : > { %p2820_p2 = scmp.eq.s32.totalorder (!%p2819_p1), %s2442_s25, 0 }
  0x70   : > { %538 = sbr.rel (%p2819_p1) target bundleno = 2306 (0x902), region = 84 }
  0x75   : > { %2281 = dma.done.wait (%p2820_p2), [#allocation3], 16   ;;  %p2821_p13 = pmov %p2820_p2 }
  0x76   : > { %p2822_p9 = pmov %p2820_p2 }
  0x77   : > { %2283 = vsyncadd (%p2821_p13), [#allocation3], 4294967280 }
  0x78   : > { %2285 = dma.done.wait (%p2822_p9), [#allocation6], 32   ;;  %p2823_p3 = pmov %p2820_p2 }
  0x79   : > { %p2824_p5 = pmov %p2820_p2 }
  0x7a   : > { %2287 = vsyncadd (%p2823_p3), [#allocation6], 4294967264 }
  0x7b   : > { %2289 = dma.done.wait (%p2824_p5), [#allocation9], 32   ;;  %p2825_p12 = pmov %p2820_p2 }
  0x7c   : > { %p2826_p6 = pmov %p2820_p2 }
  0x7d   : > { %2291 = vsyncadd (%p2825_p12), [#allocation9], 4294967264 }
  0x7e   : > { %2293 = dma.done.wait (%p2826_p6), [#allocation12], 32   ;;  %p2827_p10 = pmov %p2820_p2 }
  0x7f   : > { %p616_p4 = scmp.lt.s32.totalorder %s2442_s25, 1  ;;  %vm683_vm0 = vcmask 392192   ;;  %s2828_s26 = sld [smem:[#allocation26_spill]]  ;;  %vm630_vm1 = vcmask 261120   ;;  %v2017_v12 = vld [vmem:[%s2785_s6 + $0x10] sm:$0xff]   ;;  %v2323_v13 = vmov 0.0  }
  0x80   : > { %2295 = vsyncadd (%p2827_p10), [#allocation12], 4294967264  ;;  %1801 = vmatprep.subr.bf16.mxu0 %v2323_v13  ;;  %vm2324_vm2 = vmmov 0   ;;  %v2018_v14 = vld [vmem:[%s2785_s6 + $0x8] sm:$0xff]   ;;  %1819 = vmatprep.subr.bf16.mxu1 %v2323_v13  ;;  %v2019_v15 = vld [vmem:[%s2785_s6] sm:$0xff]   ;;  %vm846_vm3 = vcmask 64512  }
  0x81   : > { %s617_s27 = scalar_select %p616_p4, %s2442_s25, 1  ;;  %1807 = vmatprep.mubr.msk.bf16.mxu0 %vm2324_vm2, %v2323_v13  ;;  %1802 = vmatpush3.bf16.msra.mxu0 %v2017_v12  ;;  %v1729_v42 = vld [vmem:[#allocation5] ss:$0 sm:$0xff]  ;;  %v1730_v44 = vld [vmem:[#allocation7] ss:$0 sm:$0xff]  ;;  %v2020_v53 = vld [vmem:[%s2786_s7 + $0x8] sm:$0xff]  }
  0x82   : > { %1803 = vmatprep.subr.bf16.mxu0 %v2323_v13  ;;  %1821 = vmatprep.mubr.msk.bf16.mxu1 %vm2324_vm2, %v2323_v13  ;;  %v1727_v49 = vld [vmem:[%s2781_s2] ss:$0 sm:$0xff]  ;;  %s2326_s28 = smov 112   ;;  %s2327_s30 = smov 104   ;;  %vm893_vm4 = vcmask 130048   ;;  %vm1292_vm5 = vcmask 195584  }
  0x83   : > { %s1726_s18 = sshll.u32 %s617_s27, 3  ;;  %s1766_s29 = sshll.u32 %s617_s27, 4  ;;  %v1728_v57 = vld [vmem:[#allocation2] ss:$0 sm:$0xff]  ;;  %vm1505_vm6 = vcmask 523264  }
  0x84   : > { %s624_s23 = scalar_lea.vmem %s2780_s1, %s1726_s18  ;;  %v2021_v59 = vld [vmem:[%s2786_s7] sm:$0xff]   ;;  %s2328_s17 = smov 88  }
  0x85   : > { %s620_s4 = scalar_lea.vmem %s2828_s26, %s1766_s29  ;;  %v2571_v0 = vld [vmem:[%s624_s23] sm:$0xff]  ;;  %1804 = vmatpush3.bf16.msra.mxu0 %v2018_v14  ;;  %s2329_s27 = smov 80  }
  0x86   : > { %v2573_v1 = vld [vmem:[%s620_s4] sm:$0xff]  ;;  %v2575_v2 = vld [vmem:[%s620_s4 + $0x8] sm:$0xff]  ;;  %v684_v3 = vsel %vm683_vm0, %v2571_v0, 0.0  ;;  %v689_v5 = vmul.f32 %v2571_v0, %v2571_v0  ;;  %1805 = vmatprep.subr.bf16.mxu0 %v2323_v13  ;;  %s2325_s4 = smov 120   ;;  %s2330_s18 = smov 96  }
  0x87   : > { %v631_v4 = vsel %vm630_vm1, %v2573_v1, 0.0  ;;  %685 = vadd.xlane.f32.xlu0 %v684_v3  ;;  %v640_v6 = vmul.f32 %v2573_v1, %v2573_v1  ;;  %v641_v7 = vmul.f32 %v2575_v2, %v2575_v2  ;;  %v634_v9 = vsel %vm630_vm1, %v2575_v2, 0.0  ;;  %s2331_s29 = smov 72   ;;  %s2332_s23 = smov 8  }
  0x88   : > { %632 = vadd.xlane.f32.xlu1 %v631_v4  ;;  %v690_v8 = vsel %vm683_vm0, %v689_v5, 0.0  ;;  %s2333_s24 = smov 16   ;;  %p2829_p8 = scmp.ne.s32.totalorder %s2812_s0, 0 }
  0x89   : > { %v642_v10 = vsel %vm630_vm1, %v640_v6, 0.0  ;;  %v645_v11 = vsel %vm630_vm1, %v641_v7, 0.0  ;;  %1806 = vmatpush3.bf16.msra.mxu0 %v2019_v15  ;;  %s2335_s20 = smov [#allocation14]  }
  0x8a   : > { %1811 = vmatprep.subr.bf16.mxu0 %v2323_v13  ;;  %s2242_s26 = sshll.u32 %s2335_s20, 4  ;;  %s2243_s26 = int_to_ptr.vmem [resolvable:$false] %s2242_s26 }
  0x8b   : > { %691 = vadd.xlane.f32.xlu0 %v690_v8 }
  0x8c   : > { %635 = vadd.xlane.f32.xlu1 %v634_v9 }
  0x8f   : > { %643 = vadd.xlane.f32.xlu0 %v642_v10 }
  0x90   : > { %646 = vadd.xlane.f32.xlu1 %v645_v11 }
 0x110   : > { %v686_v16 = vpop.xlane.xlu0 %685 }
 0x111   : > { %v633_v17 = vpop.xlane.xlu1 %632  ;;  %v688_v18 = vmul.f32 0.020833334, %v686_v16 }
 0x112   : > { %v638_v22 = vmul.f32 0.03125, %v633_v17 }
 0x113   : > { %v694_v21 = vmul.f32 %v688_v18, %v688_v18  ;;  %v697_v40 = vsub.f32 %v2571_v0, %v688_v18 }
 0x114   : > { %v692_v19 = vpop.xlane.xlu0 %691  ;;  %v650_v29 = vmul.f32 %v638_v22, %v638_v22  ;;  %v656_v45 = vsub.f32 %v2573_v1, %v638_v22 }
 0x115   : > { %v636_v20 = vpop.xlane.xlu1 %635  ;;  %v693_v23 = vmul.f32 0.020833334, %v692_v19 }
 0x116   : > { %v639_v24 = vmul.f32 0.03125, %v636_v20 }
 0x117   : > { %v695_v25 = vsub.f32 %v693_v23, %v694_v21 }
 0x118   : > { %v651_v26 = vmul.f32 %v639_v24, %v639_v24  ;;  %v644_v27 = vpop.xlane.xlu0 %643  ;;  %v657_v48 = vsub.f32 %v2575_v2, %v639_v24 }
 0x119   : > { %v647_v28 = vpop.xlane.xlu1 %646  ;;  %v696_v30 = vmax.f32 %v695_v25, 0.0  ;;  %v648_v31 = vmul.f32 0.03125, %v644_v27 }
 0x11a   : > { %v649_v32 = vmul.f32 0.03125, %v647_v28 }
 0x11b   : > { %v698_v33 = vadd.f32 1e-05, %v696_v30  ;;  %v652_v34 = vsub.f32 %v648_v31, %v650_v29 }
 0x11c   : > { %v653_v35 = vsub.f32 %v649_v32, %v651_v26 }
 0x11d   : > { %2030 = vrsqrt.f32 %v698_v33  ;;  %v654_v36 = vmax.f32 %v652_v34, 0.0 }
 0x11e   : > { %v655_v37 = vmax.f32 %v653_v35, 0.0 }
 0x11f   : > { %v658_v38 = vadd.f32 1e-05, %v654_v36 }
 0x120   : > { %v659_v39 = vadd.f32 1e-05, %v655_v37 }
 0x121   : > { %2032 = vrsqrt.f32 %v658_v38 }
 0x122   : > { %2034 = vrsqrt.f32 %v659_v39 }
 0x12a   : > { %v2031_v41 = vpop.eup %2030 }
 0x12b   : > { %v700_v43 = vmul.f32 %v2031_v41, %v697_v40 }
 0x12d   : > { %v707_v46 = vmul.f32 %v1729_v42, %v700_v43 }
 0x12e   : > { %v2033_v47 = vpop.eup %2032 }
 0x12f   : > { %v2035_v50 = vpop.eup %2034  ;;  %v714_v51 = vadd.f32 %v1730_v44, %v707_v46  ;;  %v662_v52 = vmul.f32 %v2033_v47, %v656_v45 }
 0x130   : > { %v663_v54 = vmul.f32 %v2035_v50, %v657_v48 }
 0x131   : > { %v715_v55 = vpack.c.bf16 %v714_v51, %v714_v51  ;;  %v670_v56 = vmul.f32 %v1727_v49, %v662_v52 }
 0x132   : > { %v671_v58 = vmul.f32 %v1727_v49, %v663_v54 }
 0x133   : > { %1808 = vmatmul.mubr.msk.bf16.vlgmr.msra.gmra.mxu0 %vm683_vm0, %v715_v55  ;;  %v678_v60 = vadd.f32 %v1728_v57, %v670_v56 }
 0x134   : > { %1812 = vmatpush3.bf16.msra.mxu0 %v2020_v53  ;;  %1815 = vmatprep.mubr.msk.bf16.mxu0 %vm2324_vm2, %v2323_v13  ;;  %v679_v61 = vadd.f32 %v1728_v57, %v671_v58 }
 0x135   : > { %1813 = vmatprep.subr.bf16.mxu0 %v2323_v13 }
 0x136   : > { %v783_v62 = vpack.c.bf16 %v679_v61, %v678_v60 }
 0x138   : > { %1814 = vmatpush3.bf16.msra.mxu0 %v2021_v59 }
 0x139   : > { %1825 = vmatprep.subr.bf16.mxu0 %v2323_v13 }
 0x13b   : > { %1816 = vmatmul.mubr.msk.bf16.vlgmr.msra.gmra.mxu0 %vm630_vm1, %v783_v62 }
 0x13c   : > { %1827 = vmatprep.mubr.msk.bf16.mxu0 %vm2324_vm2, %v2323_v13 }
 0x1f3   : > { %v777_v63 = vpop.f32.mrf.mxu0 }
 0x1f4   : > { %v844_v0 = vpack.c.bf16 %v777_v63, %v777_v63 }
 0x1f5   : > { %v1809_v1 = vpop.f32.mrf.mxu0 }
 0x1f6   : > { %954 = vrot.lane.b32.xlu1 %v844_v0, %s2325_s4 }
 0x1f7   : > { %v780_v2 = vpop.f32.mrf.mxu0 }
 0x1f9   : > { %v1810_v3 = vpop.f32.mrf.mxu0 }
 0x1fb   : > { %v837_v4 = vpop.f32.mrf.mxu0 }
 0x1fd   : > { %v1817_v5 = vpop.f32.mrf.mxu0 }
 0x1ff   : > { %v840_v6 = vpop.f32.mrf.mxu0 }
 0x200   : > { %v2630_v7 = vpack.c.bf16 %v840_v6, %v837_v4 }
 0x201   : > { %v1818_v8 = vpop.f32.mrf.mxu0 }
 0x202   : > { %1064 = vrot.lane.b32.xlu1 %v2630_v7, %s2326_s28  ;;  %956 = vrot.lane.b32.xlu0 %v2630_v7, %s2325_s4  ;;  %v851_v9 = vsel %vm846_vm3, %v2630_v7, 0  ;;  %s2334_s4 = smov 24  }
 0x203   : > { %1820 = vmatpush3.bf16.xpose.msra.mxu1 %v851_v9 }
 0x204   : > { %1831 = vmatprep.subr.bf16.mxu1 %v2323_v13 }
 0x206   : > { %1062 = vrot.lane.b32.xlu1 %v844_v0, %s2326_s28  ;;  %1172 = vrot.lane.b32.xlu0 %v2630_v7, %s2327_s30 }
 0x20a   : > { %1170 = vrot.lane.b32.xlu1 %v844_v0, %s2327_s30  ;;  %1822 = vmatmul.mubr.msk.bf16.vlgmr.msra.gmra.mxu1 %vm846_vm3, %v844_v0 }
 0x20b   : > { %1833 = vmatprep.mubr.msk.bf16.mxu1 %vm2324_vm2, %v2323_v13 }
 0x268   : > { %v955_v12 = vpop.permute.xlu1 %954 }
 0x274   : > { %v957_v10 = vpop.permute.xlu0 %956  ;;  %v1065_v14 = vpop.permute.xlu1 %1064 }
 0x275   : > { %v962_v11 = vsel %vm846_vm3, %v957_v10, 0  ;;  %v1070_v15 = vsel %vm846_vm3, %v1065_v14, 0 }
 0x276   : > { %1832 = vmatpush3.bf16.xpose.msra.mxu1 %v962_v11 }
 0x277   : > { %1843 = vmatprep.subr.bf16.mxu1 %v2323_v13 }
 0x278   : > { %v1173_v16 = vpop.permute.xlu0 %1172  ;;  %v1063_v17 = vpop.permute.xlu1 %1062 }
 0x279   : > { %v1178_v18 = vsel %vm846_vm3, %v1173_v16, 0 }
 0x27c   : > { %v1171_v19 = vpop.permute.xlu1 %1170 }
 0x27d   : > { %1834 = vmatmul.mubr.msk.bf16.vlgmr.msra.gmra.mxu1 %vm846_vm3, %v955_v12 }
 0x27e   : > { %1844 = vmatpush3.bf16.xpose.msra.mxu1 %v1070_v15  ;;  %1845 = vmatprep.mubr.msk.bf16.mxu1 %vm2324_vm2, %v2323_v13 }
 0x27f   : > { %1855 = vmatprep.subr.bf16.mxu1 %v2323_v13 }
 0x285   : > { %1846 = vmatmul.mubr.msk.bf16.vlgmr.msra.gmra.mxu1 %vm846_vm3, %v1063_v17 }
 0x286   : > { %1856 = vmatpush3.bf16.xpose.msra.mxu1 %v1178_v18  ;;  %1857 = vmatprep.mubr.msk.bf16.mxu1 %vm2324_vm2, %v2323_v13 }
 0x287   : > { %1867 = vmatprep.subr.bf16.mxu1 %v2323_v13 }
 0x28d   : > { %1858 = vmatmul.mubr.msk.bf16.vlgmr.msra.gmra.mxu1 %vm846_vm3, %v1171_v19 }
 0x28e   : > { %1871 = vmatprep.mubr.msk.bf16.mxu1 %vm2324_vm2, %v2323_v13 }
 0x2ca   : > { %v887_v20 = vpop.f32.mrf.mxu1 }
 0x2cb   : > { %v894_v21 = vsel %vm893_vm4, %v887_v20, -inf }
 0x2cc   : > { %895 = vmax.xlane.f32.xlu0 %v894_v21  ;;  %v1823_v22 = vpop.f32.mrf.mxu1 }
 0x2ce   : > { %v890_v23 = vpop.f32.mrf.mxu1 }
 0x2d0   : > { %v1824_v24 = vpop.f32.mrf.mxu1 }
 0x33d   : > { %v998_v25 = vpop.f32.mrf.mxu1 }
 0x33e   : > { %v1004_v26 = vsel %vm893_vm4, %v998_v25, -inf }
 0x33f   : > { %1005 = vmax.xlane.f32.xlu1 %v1004_v26  ;;  %v1835_v27 = vpop.f32.mrf.mxu1 }
 0x341   : > { %v1001_v28 = vpop.f32.mrf.mxu1 }
 0x343   : > { %v1836_v29 = vpop.f32.mrf.mxu1 }
 0x345   : > { %v1106_v30 = vpop.f32.mrf.mxu1 }
 0x346   : > { %v1112_v31 = vsel %vm893_vm4, %v1106_v30, -inf }
 0x347   : > { %1113 = vmax.xlane.f32.xlu0 %v1112_v31  ;;  %v1847_v32 = vpop.f32.mrf.mxu1 }
 0x349   : > { %v1109_v33 = vpop.f32.mrf.mxu1 }
 0x34b   : > { %v1848_v34 = vpop.f32.mrf.mxu1 }
 0x34d   : > { %v1214_v35 = vpop.f32.mrf.mxu1 }
 0x34e   : > { %v1220_v36 = vsel %vm893_vm4, %v1214_v35, -inf }
 0x34f   : > { %1221 = vmax.xlane.f32.xlu0 %v1220_v36  ;;  %v1859_v37 = vpop.f32.mrf.mxu1 }
 0x351   : > { %v1217_v38 = vpop.f32.mrf.mxu1 }
 0x353   : > { %v1860_v39 = vpop.f32.mrf.mxu1 }
 0x355   : > { %v896_v40 = vpop.xlane.xlu0 %895 }
 0x356   : > { %v897_v41 = vsub.f32 %v887_v20, %v896_v40  ;;  %v2022_v20 = vld [vmem:[%s2787_s8 + $0x8] sm:$0xff]  }
 0x357   : > { %1868 = vmatpush3.bf16.msra.mxu1 %v2022_v20 }
 0x358   : > { %v898_v42 = vmul.f32 1.442695, %v897_v41  ;;  %1869 = vmatprep.subr.bf16.mxu1 %v2323_v13 }
 0x35a   : > { %2036 = vpow2.f32 %v898_v42  ;;  %v1746_v42 = vld [vmem:[#allocation8] ss:$0 sm:$0xff] }
 0x367   : > { %v2037_v43 = vpop.eup %2036 }
 0x368   : > { %v900_v44 = vsel %vm893_vm4, %v2037_v43, 0.0 }
 0x369   : > { %901 = vadd.xlane.f32.xlu0 %v900_v44 }
 0x3c8   : > { %v1006_v45 = vpop.xlane.xlu1 %1005 }
 0x3c9   : > { %v1007_v46 = vsub.f32 %v998_v25, %v1006_v45 }
 0x3cb   : > { %v1008_v47 = vmul.f32 1.442695, %v1007_v46 }
 0x3cd   : > { %2038 = vpow2.f32 %v1008_v47 }
 0x3d0   : > { %v1114_v48 = vpop.xlane.xlu0 %1113 }
 0x3d1   : > { %v1115_v49 = vsub.f32 %v1106_v30, %v1114_v48  ;;  %v2023_v30 = vld [vmem:[%s2787_s8] sm:$0xff]  }
 0x3d2   : > { %1870 = vmatpush3.bf16.msra.mxu1 %v2023_v30 }
 0x3d3   : > { %v1116_v50 = vmul.f32 1.442695, %v1115_v49  ;;  %1883 = vmatprep.subr.bf16.mxu1 %v2323_v13 }
 0x3d5   : > { %2040 = vpow2.f32 %v1116_v50 }
 0x3d8   : > { %v1222_v55 = vpop.xlane.xlu0 %1221 }
 0x3d9   : > { %v1223_v56 = vsub.f32 %v1214_v35, %v1222_v55 }
 0x3da   : > { %v2039_v51 = vpop.eup %2038 }
 0x3db   : > { %v1010_v52 = vsel %vm893_vm4, %v2039_v51, 0.0  ;;  %v1224_v57 = vmul.f32 1.442695, %v1223_v56 }
 0x3dc   : > { %1011 = vadd.xlane.f32.xlu1 %v1010_v52  ;;  %v2025_v52 = vld [vmem:[%s2791_s12] sm:$0xff]  }
 0x3dd   : > { %2042 = vpow2.f32 %v1224_v57 }
 0x3e2   : > { %v2041_v53 = vpop.eup %2040 }
 0x3e3   : > { %v1118_v54 = vsel %vm893_vm4, %v2041_v53, 0.0 }
 0x3e4   : > { %1119 = vadd.xlane.f32.xlu0 %v1118_v54 }
 0x3ea   : > { %v2043_v58 = vpop.eup %2042 }
 0x3eb   : > { %v1226_v59 = vsel %vm893_vm4, %v2043_v58, 0.0 }
 0x3ed   : > { %1016 = vrot.lane.b32.xlu1 %v2630_v7, %s2328_s17 }
 0x3f1   : > { %1124 = vrot.lane.b32.xlu1 %v2630_v7, %s2329_s27  ;;  %s1763_s27 = sshll.u32 %s2442_s25, 7 }
 0x3f2   : > { %v902_v60 = vpop.xlane.xlu0 %901 }
 0x3f3   : > { %2044 = vrcp.f32 %v902_v60 }
 0x3fa   : > { %907 = vrot.lane.b32.xlu0 %v2630_v7, %s2330_s18 }
 0x400   : > { %v2045_v62 = vpop.eup %2044 }
 0x401   : > { %v904_v0 = vmul.f32 %v2045_v62, %v2037_v43 }
 0x403   : > { %v905_v2 = vpack.c.bf16 %v904_v0, %v904_v0 }
 0x415   : > { %1227 = vadd.xlane.f32.xlu1 %v1226_v59 }
 0x426   : > { %1232 = vrot.lane.b32.xlu1 %v2630_v7, %s2331_s29 }
 0x465   : > { %v1012_v61 = vpop.xlane.xlu1 %1011 }
 0x466   : > { %2046 = vrcp.f32 %v1012_v61 }
 0x469   : > { %v1017_v4 = vpop.permute.xlu1 %1016 }
 0x46d   : > { %v1120_v63 = vpop.xlane.xlu0 %1119  ;;  %v1125_v8 = vpop.permute.xlu1 %1124 }
 0x46e   : > { %2048 = vrcp.f32 %v1120_v63  ;;  %v1750_v63 = vld [vmem:[#allocation10] ss:$0 sm:$0xff] }
 0x471   : > { %v908_v1 = vpop.permute.xlu0 %907 }
 0x472   : > { %1826 = vmatpush3.bf16.msra.mxu0 %v908_v1  ;;  %v1751_v1 = vld [vmem:[#allocation11] ss:$0 sm:$0xff] }
 0x473   : > { %1837 = vmatprep.subr.bf16.mxu0 %v2323_v13  ;;  %v2047_v3 = vpop.eup %2046 }
 0x474   : > { %v1014_v5 = vmul.f32 %v2047_v3, %v2039_v51  ;;  %v2024_v51 = vld [vmem:[%s2791_s12 + $0x8] sm:$0xff]  }
 0x475   : > { %1828 = vmatmul.mubr.msk.bf16.vlgmr.msra.gmra.mxu0 %vm893_vm4, %v905_v2 }
 0x476   : > { %1838 = vmatpush3.bf16.msra.mxu0 %v1017_v4  ;;  %1839 = vmatprep.mubr.msk.bf16.mxu0 %vm2324_vm2, %v2323_v13  ;;  %v1015_v6 = vpack.c.bf16 %v1014_v5, %v1014_v5  ;;  %v2026_v5 = vld [vmem:[%s2793_s14 + $0x18] sm:$0xff]  }
 0x477   : > { %1849 = vmatprep.subr.bf16.mxu0 %v2323_v13 }
 0x47b   : > { %v2049_v7 = vpop.eup %2048 }
 0x47c   : > { %v1122_v9 = vmul.f32 %v2049_v7, %v2041_v53  ;;  %v2028_v7 = vld [vmem:[%s2793_s14 + $0x8] sm:$0xff]  }
 0x47d   : > { %1840 = vmatmul.mubr.msk.bf16.vlgmr.msra.gmra.mxu0 %vm893_vm4, %v1015_v6  ;;  %v2027_v6 = vld [vmem:[%s2793_s14 + $0x10] sm:$0xff]  }
 0x47e   : > { %1850 = vmatpush3.bf16.msra.mxu0 %v1125_v8  ;;  %1851 = vmatprep.mubr.msk.bf16.mxu0 %vm2324_vm2, %v2323_v13  ;;  %v1123_v10 = vpack.c.bf16 %v1122_v9, %v1122_v9  ;;  %v2029_v8 = vld [vmem:[%s2793_s14] sm:$0xff]   ;;  %v1752_v9 = vld [vmem:[#allocation13] ss:$0 sm:$0xff] }
 0x47f   : > { %1861 = vmatprep.subr.bf16.mxu0 %v2323_v13 }
 0x485   : > { %1852 = vmatmul.mubr.msk.bf16.vlgmr.msra.gmra.mxu0 %vm893_vm4, %v1123_v10 }
 0x486   : > { %1863 = vmatprep.mubr.msk.bf16.mxu0 %vm2324_vm2, %v2323_v13 }
 0x49e   : > { %v1228_v11 = vpop.xlane.xlu1 %1227 }
 0x49f   : > { %2050 = vrcp.f32 %v1228_v11 }
 0x4a2   : > { %v1233_v12 = vpop.permute.xlu1 %1232 }
 0x4a3   : > { %1862 = vmatpush3.bf16.msra.mxu0 %v1233_v12 }
 0x4a4   : > { %1875 = vmatprep.subr.bf16.mxu0 %v2323_v13 }
 0x4ac   : > { %v2051_v14 = vpop.eup %2050 }
 0x4ad   : > { %v1230_v15 = vmul.f32 %v2051_v14, %v2043_v58 }
 0x4af   : > { %v1231_v16 = vpack.c.bf16 %v1230_v15, %v1230_v15 }
 0x4b1   : > { %1864 = vmatmul.mubr.msk.bf16.vlgmr.msra.gmra.mxu0 %vm893_vm4, %v1231_v16 }
 0x4b2   : > { %1879 = vmatprep.mubr.msk.bf16.mxu0 %vm2324_vm2, %v2323_v13  ;;  %1876 = vmatpush3.bf16.msra.mxu0 %v2024_v51 }
 0x4b3   : > { %1877 = vmatprep.subr.bf16.mxu0 %v2323_v13 }
 0x4b6   : > { %1878 = vmatpush3.bf16.msra.mxu0 %v2025_v52 }
 0x535   : > { %v947_v17 = vpop.f32.mrf.mxu0 }
 0x537   : > { %v1829_v18 = vpop.f32.mrf.mxu0 }
 0x539   : > { %v950_v19 = vpop.f32.mrf.mxu0 }
 0x53b   : > { %v1830_v21 = vpop.f32.mrf.mxu0 }
 0x53c   : > { %v1756_v21 = vld [vmem:[%s2794_s15] ss:$0 sm:$0xff] }
 0x53d   : > { %v1056_v22 = vpop.f32.mrf.mxu0 }
 0x53e   : > { %1279 = vrot.lane.b32.xlu0 %v1056_v22, %s2332_s23  ;;  %s2737_s23 = scalar_lea.hbm %s2795_s16, %s1763_s27 }
 0x53f   : > { %v1841_v23 = vpop.f32.mrf.mxu0 }
 0x541   : > { %v1059_v24 = vpop.f32.mrf.mxu0 }
 0x543   : > { %v1842_v25 = vpop.f32.mrf.mxu0 }
 0x545   : > { %v1164_v26 = vpop.f32.mrf.mxu0 }
 0x546   : > { %1283 = vrot.lane.b32.xlu1 %v1164_v26, %s2333_s24 }
 0x547   : > { %v1853_v27 = vpop.f32.mrf.mxu0 }
 0x549   : > { %v1167_v28 = vpop.f32.mrf.mxu0 }
 0x54b   : > { %v1854_v29 = vpop.f32.mrf.mxu0 }
 0x571   : > { %v1272_v31 = vpop.f32.mrf.mxu0 }
 0x572   : > { %1287 = vrot.lane.b32.xlu0 %v1272_v31, %s2334_s4  ;;  %s613_s4 = sand.u32 1, %s2306_s22  }
 0x573   : > { %v1865_v32 = vpop.f32.mrf.mxu0  ;;  %s1723_s28 = sshll.u32 %s613_s4, 3  ;;  %s1552_s25 = scalar_lea.sflag [#allocation4], %s613_s4 }
 0x574   : > { %s615_s18 = scalar_lea.vmem [#allocation14], %s1723_s28  ;;  %s2244_s28 = scalar_lea.vmem %s2243_s26, 256 }
 0x575   : > { %v1275_v33 = vpop.f32.mrf.mxu0  ;;  %s1565_s29 = sshll.u32 %s615_s18, 4  ;;  %s2739_s29 = int_to_ptr.vmem [resolvable:$true] %s1565_s29 }
 0x576   : > { %s2238_s24 = scalar_lea.vmem %s2739_s29, 128  ;;  %p2245_p1 = scmp.lt.s32.totalorder %s2739_s29, %s2243_s26 }
 0x577   : > { %v1866_v34 = vpop.f32.mrf.mxu0  ;;  %p2239_p7 = scmp.ne.s32.totalorder %s2739_s29, %s2238_s24  ;;  %p2246_p2 = scmp.lt.s32.totalorder %s2244_s28, %s2238_s24 }
 0x579   : > { %p2240_p11 = pnand %p2239_p7, %p2829_p8  ;;  %p2247_p13 = por %p2246_p2, %p2245_p1 }
 0x57b   : > { %p2241_p0 = pneg %p2240_p11 }
 0x57d   : > { %p2248_p9 = pnand %p2247_p13, %p2241_p0 }
 0x5b0   : > { %v1280_v35 = vpop.permute.xlu0 %1279 }
 0x5b1   : > { %v1290_v37 = vsel %vm846_vm3, %v947_v17, %v1280_v35 }
 0x5b8   : > { %v1284_v36 = vpop.permute.xlu1 %1283 }
 0x5b9   : > { %v1291_v38 = vsel %vm893_vm4, %v1290_v37, %v1284_v36 }
 0x5e4   : > { %v1288_v39 = vpop.permute.xlu0 %1287 }
 0x5e5   : > { %v1293_v40 = vsel %vm1292_vm5, %v1291_v38, %v1288_v39 }
 0x5e6   : > { %v1294_v41 = vpack.c.bf16 %v1293_v40, %v1293_v40 }
 0x5e8   : > { %1872 = vmatmul.mubr.msk.bf16.vlgmr.msra.gmra.mxu1 %vm630_vm1, %v1294_v41 }
 0x5e9   : > { %1891 = vmatprep.mubr.msk.bf16.mxu1 %vm2324_vm2, %v2323_v13  ;;  %1884 = vmatpush3.bf16.msra.mxu1 %v2026_v5 }
 0x5ea   : > { %1885 = vmatprep.subr.bf16.mxu1 %v2323_v13 }
 0x5ed   : > { %1886 = vmatpush3.bf16.msra.mxu1 %v2027_v6 }
 0x5ee   : > { %1887 = vmatprep.subr.bf16.mxu1 %v2323_v13 }
 0x5f1   : > { %1888 = vmatpush3.bf16.msra.mxu1 %v2028_v7 }
 0x5f2   : > { %1889 = vmatprep.subr.bf16.mxu1 %v2323_v13 }
 0x5f5   : > { %1890 = vmatpush3.bf16.msra.mxu1 %v2029_v8 }
 0x6a8   : > { %v1355_v43 = vpop.f32.mrf.mxu1 }
 0x6a9   : > { %v2697_v44 = vadd.f32 %v1746_v42, %v1355_v43 }
 0x6aa   : > { %v1873_v45 = vpop.f32.mrf.mxu1 }
 0x6ab   : > { %v1363_v46 = vsel %vm630_vm1, %v2697_v44, 0.0  ;;  %v1367_v47 = vmul.f32 %v2697_v44, %v2697_v44 }
 0x6ac   : > { %1364 = vadd.xlane.f32.xlu1 %v1363_v46  ;;  %v1358_v48 = vpop.f32.mrf.mxu1 }
 0x6ad   : > { %v1368_v49 = vsel %vm630_vm1, %v1367_v47, 0.0 }
 0x6ae   : > { %1369 = vadd.xlane.f32.xlu0 %v1368_v49  ;;  %v1874_v50 = vpop.f32.mrf.mxu1 }
 0x735   : > { %v1365_v53 = vpop.xlane.xlu1 %1364 }
 0x736   : > { %v1366_v54 = vmul.f32 0.03125, %v1365_v53 }
 0x737   : > { %v1370_v55 = vpop.xlane.xlu0 %1369 }
 0x738   : > { %v1372_v56 = vmul.f32 %v1366_v54, %v1366_v54  ;;  %v1371_v57 = vmul.f32 0.03125, %v1370_v55  ;;  %v1375_v61 = vsub.f32 %v2697_v44, %v1366_v54 }
 0x73a   : > { %v1373_v58 = vsub.f32 %v1371_v57, %v1372_v56 }
 0x73c   : > { %v1374_v59 = vmax.f32 %v1373_v58, 0.0 }
 0x73e   : > { %v1376_v60 = vadd.f32 1e-05, %v1374_v59 }
 0x740   : > { %2052 = vrsqrt.f32 %v1376_v60 }
 0x74d   : > { %v2053_v62 = vpop.eup %2052 }
 0x74e   : > { %v1378_v0 = vmul.f32 %v2053_v62, %v1375_v61 }
 0x750   : > { %v1385_v2 = vmul.f32 %v1750_v63, %v1378_v0 }
 0x752   : > { %v1392_v3 = vadd.f32 %v1751_v1, %v1385_v2 }
 0x754   : > { %v1393_v4 = vpack.c.bf16 %v1392_v3, %v1392_v3 }
 0x756   : > { %1880 = vmatmul.mubr.msk.bf16.vlgmr.msra.gmra.mxu0 %vm630_vm1, %v1393_v4 }
 0x816   : > { %v1454_v10 = vpop.f32.mrf.mxu0 }
 0x817   : > { %v1455_v11 = vadd.f32 %v1752_v9, %v1454_v10 }
 0x818   : > { %v1881_v12 = vpop.f32.mrf.mxu0 }
 0x819   : > { %v1461_v14 = vmul.f32 0.70710677, %v1455_v11  ;;  %v1460_v18 = vmul.f32 0.5, %v1455_v11 }
 0x81a   : > { %v1457_v15 = vpop.f32.mrf.mxu0 }
 0x81b   : > { %2054 = verf.f32 %v1461_v14 }
 0x81c   : > { %v1882_v16 = vpop.f32.mrf.mxu0 }
 0x828   : > { %v2055_v17 = vpop.eup %2054 }
 0x829   : > { %v1463_v19 = vadd.f32 1.0, %v2055_v17 }
 0x82b   : > { %v1464_v20 = vmul.f32 %v1463_v19, %v1460_v18 }
 0x82d   : > { %v1465_v13 = vpack.c.bf16 %v1464_v20, %v1464_v20 }
 0x82f   : > { %1892 = vmatmul.mubr.msk.bf16.vlgmr.msra.gmra.mxu1 %vm1505_vm6, %v1465_v13 }
 0x8ef   : > { %v1543_v22 = vpop.f32.mrf.mxu1 }
 0x8f0   : > { %v1544_v23 = vadd.f32 %v1756_v21, %v1543_v22 }
 0x8f1   : > { %v1893_v24 = vpop.f32.mrf.mxu1 }
 0x8f2   : > { %v1549_v25 = vadd.f32 %v1544_v23, %v2697_v44 }
 0x8f3   : > { %v1546_v26 = vpop.f32.mrf.mxu1 }
 0x8f4   : > { %1550 = vst.msk [vmem:[%s615_s18] sm:$0xff] %vm630_vm1, %v1549_v25 }
 0x8f5   : > { %v1894_v27 = vpop.f32.mrf.mxu1 }
 0x8f6   : > { %2251 = shalt.err (!%p2248_p9)
}
 0x8f7   : > { %s2252_s30 = scalar_lea.hbm %s2737_s23, 128  ;;  %s2256_s27 = scalar_lea.hbm %s2795_s16, 256 }
 0x8f8   : > { %p2253_p3 = scmp.ne.s32.totalorder %s2737_s23, %s2252_s30  ;;  %p2257_p6 = scmp.lt.s32.totalorder %s2737_s23, %s2795_s16 }
 0x8f9   : > { %p2258_p10 = scmp.lt.s32.totalorder %s2256_s27, %s2252_s30 }
 0x8fa   : > { %p2254_p5 = pnand %p2253_p3, %p2829_p8 }
 0x8fb   : > { %p2259_p4 = por %p2258_p10, %p2257_p6 }
 0x8fc   : > { %p2255_p12 = pneg %p2254_p5 }
 0x8fe   : > { %p2260_p7 = pnand %p2259_p4, %p2255_p12 }
 0x900   : > { %2263 = shalt.err (!%p2260_p7)
}
 0x901   : > { %1923 = dma.vmem_to_hbm [thread:$0]  (%p2829_p8), %s2739_s29, 128, %s2737_s23, %s1552_s25  }
 0x902 PF: > { %s2830_s21 = sld [smem:[#allocation22_spill]] }
 0x903   : > { %s2831_s24 = sld [smem:[#allocation20_spill]] }
 0x904   : > { %s2832_s20 = sld [smem:[#allocation25_spill]] }
 0x908   : > { %p1965_p11 = scmp.ge.s32.totalorder %s2830_s21, 2 }
 0x909   : > { %s1577_s26 = sand.u32 1, %s2831_s24  }
 0x90a   : > { %p2833_p0 = scmp.ne.s32.totalorder %s2832_s20, 0  ;;  %s1578_s28 = scalar_lea.sflag [#allocation4], %s1577_s26 }
 0x90c   : > { %p1948_p1 = pnand %p1965_p11, %p2833_p0 }
 0x90e   : > { %p1949_p2 = pneg %p1948_p1 }
 0x910   : > { %2297 = dma.done.wait (%p1949_p2), %s1578_s28, 128  }
 0x911   : > { %2299 = vsyncadd (%p1949_p2), %s1578_s28, 4294967168  ;;  %s2834_s24 = sld [smem:[#allocation23_spill]]  ;;  %s2837_s21 = smov %s2306_s22 }
 0x912   : > { %s2835_s30 = sld [smem:[#allocation21_spill]] }
 0x913   : > { %s2836_s23 = sld [smem:[#allocation24_spill]] }
 0x917   : > { %p30_p13 = scmp.ge.s32.totalorder %s2834_s24, 4  }
 0x918   : > { %s2838_s22 = smov %s2835_s30 }
 0x919   :  { %32 = sbr.rel (!%p30_p13) target bundleno = 10 (0xa), region = 151 }
 0x91e   :  { %1583 = vsyncpa [#allocation3], 1 }
 0x91f   :  { %1585 = vsyncpa [#allocation3 + $0x1], 1 }
 0x920   :  { %1586 = vsyncpa [#allocation6], 1 }
 0x921   :  { %1587 = vsyncpa [#allocation9], 1 }
 0x922   :  { %1588 = vsyncpa [#allocation12], 1 }
 0x923   :  { %1589 = vsyncpa [#allocation4], 1 }
 0x924   :  { %1591 = vsyncpa [#allocation4 + $0x1], 1 }

</bundles_post_ra>
